<compile_context>
chip_gen: v6e
topology: v6e:2x2x1
jax: 0.10.0
libtpu: 0.0.40
codegen_flags: <defaults>
</compile_context>

<pallas_src>
import functools

import jax
import jax.numpy as jnp
from jax.experimental import pallas as pl
from jax.experimental.pallas import tpu as pltpu

IN_FEATURES = 116 * 116      # 13456
H1 = 512
H1_HALF = H1 // 2            # 256: fc1 output columns split into 2 halves
H2 = 256
OUT_FEATURES = 2

K_PAD = 13824                # 108 * 128, lane-aligned K (>= 13456)
TK = 3456                    # 27 * 128 -> K_PAD // TK = 4 K steps per half
N3_PAD = 128                 # lane-aligned fc3 output width (real width = 2)
TB_MAX = 256                 # batch tile (rows)


# ----------------------------------------------------------------------------
# Kernels
# ----------------------------------------------------------------------------
def mlp_fused_kernel(x_ref, w1_ref, b1_ref, w2_ref, b2_ref, w3_ref, b3_ref,
                     o_ref, acc1_ref, acc2_ref):
    """Fully fused path (v5e/v6e): fc1 K-tiled accumulate + relu + fc2
    accumulated across the two H1 halves + relu + fc3, one pallas_call."""
    j = pl.program_id(1)                   # H1 half index (arbitrary)
    k = pl.program_id(2)                   # K tile index (arbitrary)
    last_j = pl.num_programs(1) - 1
    last_k = pl.num_programs(2) - 1

    @pl.when(k == 0)
    def _():
        acc1_ref[...] = jnp.zeros_like(acc1_ref)

    @pl.when(jnp.logical_and(j == 0, k == 0))
    def _():
        acc2_ref[...] = jnp.zeros_like(acc2_ref)

    # fc1 partial matmul: bf16 x bf16 on the MXU, f32 accumulate.
    acc1_ref[...] += jnp.dot(x_ref[...].astype(jnp.bfloat16), w1_ref[...],
                             preferred_element_type=jnp.float32)

    @pl.when(k == last_k)
    def _():
        h1 = jnp.maximum(acc1_ref[...] + b1_ref[...], 0.0)        # relu(fc1) half
        # dropout1: identity (eval mode)
        acc2_ref[...] += jnp.dot(h1.astype(jnp.bfloat16), w2_ref[...],
                                 preferred_element_type=jnp.float32)

    @pl.when(jnp.logical_and(j == last_j, k == last_k))
    def _():
        h2 = jnp.maximum(acc2_ref[...] + b2_ref[...], 0.0)        # relu(fc2)
        # dropout2: identity (eval mode)
        o_ref[...] = (jnp.dot(h2, w3_ref[...], preferred_element_type=jnp.float32)
                      + b3_ref[...])                              # fc3


def fc1_fc2_kernel(x_ref, w1_ref, b1_ref, w2_ref, o_ref, acc_ref):
    """Split path (v7x): K-tiled fc1 for one 256-col half, relu, partial fc2."""
    k = pl.program_id(2)

    @pl.when(k == 0)
    def _():
        acc_ref[...] = jnp.zeros_like(acc_ref)

    acc_ref[...] += jnp.dot(x_ref[...].astype(jnp.bfloat16), w1_ref[...],
                            preferred_element_type=jnp.float32)

    @pl.when(k == pl.num_programs(2) - 1)
    def _():
        h1 = jnp.maximum(acc_ref[...] + b1_ref[...], 0.0)         # relu(fc1) half
        # dropout1: identity (eval mode)
        o_ref[...] = jnp.dot(h1.astype(jnp.bfloat16), w2_ref[...],
                             preferred_element_type=jnp.float32)  # partial fc2


def fc2_fc3_kernel(p_ref, b2_ref, w3_ref, b3_ref, o_ref):
    """Split-path tail: combine the two fc2 partials + bias, relu, fc3."""
    h2 = jnp.maximum(p_ref[0] + p_ref[1] + b2_ref[...], 0.0)      # relu(fc2)
    # dropout2: identity (eval mode)
    o_ref[...] = (jnp.dot(h2, w3_ref[...], preferred_element_type=jnp.float32)
                  + b3_ref[...])                                  # fc3


# ----------------------------------------------------------------------------
# Host-side helpers
# ----------------------------------------------------------------------------
def _vmem_limit_bytes(tb):
    """Actual VMEM need (double-buffered streaming tiles + scratch) + headroom."""
    per_step = (tb * TK * 4            # x tile (f32)
                + TK * H1_HALF * 2     # W1 half tile (bf16)
                + H1_HALF * 4          # b1 half
                + H1_HALF * H2 * 2     # W2 half (bf16)
                + H2 * 4               # b2
                + H2 * N3_PAD * 4      # W3
                + N3_PAD * 4           # b3
                + tb * max(H2, N3_PAD) * 4)   # output block
    scratch = tb * (H1_HALF + H2) * 4
    need = 2 * per_step + scratch
    # Headroom for compiler-internal scratch; stay well below v7x's 64 MiB.
    return int(min(need + (16 << 20), 48 << 20))


def _batch_tiling(b):
    """Return (padded batch, batch tile).  Tile is capped at TB_MAX rows so the
    x block can never blow past v7x's 64 MiB VMEM for large batches."""
    b_pad8 = ((b + 7) // 8) * 8
    if b_pad8 <= TB_MAX:
        return b_pad8, b_pad8
    b_pad = ((b + TB_MAX - 1) // TB_MAX) * TB_MAX
    return b_pad, TB_MAX


def prepare_params(w1, b1, w2, b2, w3, b3):
    """One-time weight padding / bf16 layout (kept OUT of the per-call hot path).

    Weights are stored transposed relative to torch: shape (in, out), so the
    kernels compute x @ W + b exactly like nn.Linear(x) = x @ W_t^T + b.
    W1/W2 are bf16 (halves the dominant HBM stream); biases and W3 stay f32.
    """
    w1_p = jnp.zeros((K_PAD, H1), jnp.bfloat16).at[:IN_FEATURES, :].set(
        w1.astype(jnp.bfloat16))
    b1_p = b1.reshape(1, H1).astype(jnp.float32)
    w2_p = w2.astype(jnp.bfloat16)
    b2_p = b2.reshape(1, H2).astype(jnp.float32)
    w3_p = jnp.zeros((H2, N3_PAD), jnp.float32).at[:, :OUT_FEATURES].set(
        w3.astype(jnp.float32))
    b3_p = jnp.zeros((1, N3_PAD), jnp.float32).at[0, :OUT_FEATURES].set(
        b3.astype(jnp.float32))
    return w1_p, b1_p, w2_p, b2_p, w3_p, b3_p


@functools.partial(jax.jit, static_argnames=("split_tail",))
def mlp_forward(x, w1_p, b1_p, w2_p, b2_p, w3_p, b3_p, *, split_tail=False):
    """x: any shape with prod == B * 13456 (mirrors torch .view(-1, 116*116))."""
    x = x.reshape(-1, IN_FEATURES).astype(jnp.float32)
    b = x.shape[0]
    b_pad, tb = _batch_tiling(b)
    # TODO(synk): the small per-call pad copy (~53 KB/row) could be hoisted by a
    # caller that keeps a persistent padded buffer.
    x_p = jnp.pad(x, ((0, b_pad - b), (0, K_PAD - IN_FEATURES)))

    n_b = b_pad // tb
    n_k = K_PAD // TK                   # = 4
    vmem = _vmem_limit_bytes(tb)

    if not split_tail:
        # Single fused kernel (best on single-TensorCore chips: v5e / v6e).
        out = pl.pallas_call(
            mlp_fused_kernel,
            out_shape=jax.ShapeDtypeStruct((b_pad, N3_PAD), jnp.float32),
            grid_spec=pltpu.PrefetchScalarGridSpec(
                num_scalar_prefetch=0,
                grid=(n_b, 2, n_k),
                in_specs=[
                    pl.BlockSpec((tb, TK), lambda bi, j, k: (bi, k)),      # x tile
                    pl.BlockSpec((TK, H1_HALF), lambda bi, j, k: (k, j)),  # W1 half
                    pl.BlockSpec((1, H1_HALF), lambda bi, j, k: (0, j)),   # b1 half
                    pl.BlockSpec((H1_HALF, H2), lambda bi, j, k: (j, 0)),  # W2 half
                    pl.BlockSpec((1, H2), lambda bi, j, k: (0, 0)),        # b2
                    pl.BlockSpec((H2, N3_PAD), lambda bi, j, k: (0, 0)),   # W3
                    pl.BlockSpec((1, N3_PAD), lambda bi, j, k: (0, 0)),    # b3
                ],
                out_specs=pl.BlockSpec((tb, N3_PAD), lambda bi, j, k: (bi, 0)),
                scratch_shapes=[pltpu.VMEM((tb, H1_HALF), jnp.float32),
                                pltpu.VMEM((tb, H2), jnp.float32)],
            ),
            compiler_params=pltpu.CompilerParams(
                dimension_semantics=("parallel", "arbitrary", "arbitrary"),
                vmem_limit_bytes=vmem,
            ),
        )(x_p, w1_p, b1_p, w2_p, b2_p, w3_p, b3_p)
        return out[:b, :OUT_FEATURES]

    # Split path (v7x: the 2-way "parallel" H1 split lets both TensorCores each
    # stream half of W1; the tiny tail runs in a second minimal pallas_call).
    partials = pl.pallas_call(
        fc1_fc2_kernel,
        out_shape=jax.ShapeDtypeStruct((2, b_pad, H2), jnp.float32),
        grid_spec=pltpu.PrefetchScalarGridSpec(
            num_scalar_prefetch=0,
            grid=(n_b, 2, n_k),
            in_specs=[
                pl.BlockSpec((tb, TK), lambda bi, j, k: (bi, k)),      # x tile
                pl.BlockSpec((TK, H1_HALF), lambda bi, j, k: (k, j)),  # W1 half
                pl.BlockSpec((1, H1_HALF), lambda bi, j, k: (0, j)),   # b1 half
                pl.BlockSpec((H1_HALF, H2), lambda bi, j, k: (j, 0)),  # W2 half
            ],
            out_specs=pl.BlockSpec((pl.Squeezed(), tb, H2),
                                   lambda bi, j, k: (j, bi, 0)),
            scratch_shapes=[pltpu.VMEM((tb, H1_HALF), jnp.float32)],
        ),
        compiler_params=pltpu.CompilerParams(
            dimension_semantics=("parallel", "parallel", "arbitrary"),
            vmem_limit_bytes=vmem,
        ),
    )(x_p, w1_p, b1_p, w2_p)

    out = pl.pallas_call(
        fc2_fc3_kernel,
        out_shape=jax.ShapeDtypeStruct((b_pad, N3_PAD), jnp.float32),
        grid_spec=pltpu.PrefetchScalarGridSpec(
            num_scalar_prefetch=0,
            grid=(n_b,),
            in_specs=[
                pl.BlockSpec((2, tb, H2), lambda bi: (0, bi, 0)),
                pl.BlockSpec((1, H2), lambda bi: (0, 0)),
                pl.BlockSpec((H2, N3_PAD), lambda bi: (0, 0)),
                pl.BlockSpec((1, N3_PAD), lambda bi: (0, 0)),
            ],
            out_specs=pl.BlockSpec((tb, N3_PAD), lambda bi: (bi, 0)),
        ),
        compiler_params=pltpu.CompilerParams(
            dimension_semantics=("arbitrary",),
        ),
    )(partials, b2_p, w3_p, b3_p)

    return out[:b, :OUT_FEATURES]


def _default_split_tail():
    """Keep the 2-call / 2-way-parallel structure only on 2-TensorCore chips (v7x)."""
    try:
        kind = jax.devices()[0].device_kind.lower()
    except Exception:
        return False
    return "v7" in kind


def mlp_apply(x, params):
    return mlp_forward(x, *params, split_tail=_default_split_tail())


# ----------------------------------------------------------------------------
# Parameter init (matches the torch module's init scheme)
# ----------------------------------------------------------------------------
def xavier_uniform(key, fan_in, fan_out):
    """Matches nn.init.xavier_uniform_ on a (fan_out, fan_in) Linear weight."""
    bound = jnp.sqrt(6.0 / (fan_in + fan_out))
    return jax.random.uniform(key, (fan_in, fan_out), jnp.float32, -bound, bound)


def linear_bias_init(key, fan_in, fan_out):
    """Matches PyTorch Linear default bias init U(-1/sqrt(fan_in), 1/sqrt(fan_in))."""
    bound = 1.0 / jnp.sqrt(fan_in)
    return jax.random.uniform(key, (fan_out,), jnp.float32, -bound, bound)


if __name__ == "__main__":
    root = jax.random.PRNGKey(0)
    k_x, k_w1, k_b1, k_w2, k_b2, k_w3, k_b3 = jax.random.split(root, 7)

    # Deterministic parameters (stored as (in, out) = W^T relative to torch).
    w1 = xavier_uniform(k_w1, IN_FEATURES, H1)
    b1 = linear_bias_init(k_b1, IN_FEATURES, H1)
    w2 = xavier_uniform(k_w2, H1, H2)
    b2 = linear_bias_init(k_b2, H1, H2)
    w3 = xavier_uniform(k_w3, H2, OUT_FEATURES)
    b3 = linear_bias_init(k_b3, H2, OUT_FEATURES)

    # One-time padded / bf16 weight layout (kept out of the per-call path).
    params = prepare_params(w1, b1, w2, b2, w3, b3)

    # Small batch of "connectivity-matrix"-shaped inputs: (2, 116, 116).
    x = jax.random.normal(k_x, (2, 116, 116), jnp.float32)
    xf = x.reshape(-1, IN_FEATURES)

    # Reference (a): same bf16-weight numerics the kernels use.
    h1 = jnp.maximum(jnp.dot(xf.astype(jnp.bfloat16), w1.astype(jnp.bfloat16),
                             preferred_element_type=jnp.float32) + b1, 0.0)
    h2 = jnp.maximum(jnp.dot(h1.astype(jnp.bfloat16), w2.astype(jnp.bfloat16),
                             preferred_element_type=jnp.float32) + b2, 0.0)
    ref_bf16 = jnp.dot(h2, w3, preferred_element_type=jnp.float32) + b3

    # Reference (b): full-f32 module semantics (eval-mode dropout = identity).
    r = jnp.maximum(xf @ w1 + b1, 0.0)
    r = jnp.maximum(r @ w2 + b2, 0.0)
    ref_f32 = r @ w3 + b3

    # Exercise BOTH structures (fused single-call and v7x-style split) so the
    # auto-selected path on any chip generation is covered.
    for split in (False, True):
        out = jax.block_until_ready(mlp_forward(x, *params, split_tail=split))
        assert out.shape == (2, OUT_FEATURES)
        assert jnp.allclose(out, ref_bf16, atol=2e-2, rtol=2e-2)
        assert jnp.allclose(out, ref_f32, atol=1.5e-1, rtol=5e-2)

    # Auto path (what a caller would use).
    out = jax.block_until_ready(mlp_apply(x, params))
    assert out.shape == (2, OUT_FEATURES)

    print("KERNEL_OK")
</pallas_src>

<mosaic_0001>
module attributes {stable_mosaic.version = 11 : i64} {
  func.func @mlp_fused_kernel(%arg0: i32, %arg1: i32, %arg2: i32, %arg3: memref<8x3456xf32, #tpu.memory_space<vmem>>, %arg4: memref<3456x256xbf16, #tpu.memory_space<vmem>>, %arg5: memref<1x256xf32, #tpu.memory_space<vmem>>, %arg6: memref<256x256xbf16, #tpu.memory_space<vmem>>, %arg7: memref<1x256xf32, #tpu.memory_space<vmem>>, %arg8: memref<256x128xf32, #tpu.memory_space<vmem>>, %arg9: memref<1x128xf32, #tpu.memory_space<vmem>>, %arg10: memref<8x128xf32, #tpu.memory_space<vmem>>, %arg11: memref<8x256xf32, #tpu.memory_space<vmem>>, %arg12: memref<8x256xf32, #tpu.memory_space<vmem>>) attributes {dimension_semantics = [#tpu.dimension_semantics<parallel>, #tpu.dimension_semantics<arbitrary>, #tpu.dimension_semantics<arbitrary>], iteration_bounds = array<i64: 1, 2, 4>, scalar_prefetch = 0 : i64, scratch_operands = 2 : i64, tpu.core_type = #tpu.core_type<tc>, window_params = [{transform_indices = @transform_0, window_bounds = array<i64: 8, 3456>}, {transform_indices = @transform_1, window_bounds = array<i64: 3456, 256>}, {transform_indices = @transform_2, window_bounds = array<i64: 1, 256>}, {transform_indices = @transform_3, window_bounds = array<i64: 256, 256>}, {pipeline_mode = #tpu.pipeline_mode<synchronous>, transform_indices = @transform_4, window_bounds = array<i64: 1, 256>}, {pipeline_mode = #tpu.pipeline_mode<synchronous>, transform_indices = @transform_5, window_bounds = array<i64: 256, 128>}, {pipeline_mode = #tpu.pipeline_mode<synchronous>, transform_indices = @transform_6, window_bounds = array<i64: 1, 128>}, {transform_indices = @transform_7, window_bounds = array<i64: 8, 128>}]} {
    %c0_i32 = arith.constant 0 : i32
    %0 = arith.cmpi eq, %arg2, %c0_i32 : i32
    %1 = arith.extui %0 : i1 to i32
    %c0_i32_0 = arith.constant 0 : i32
    %2 = arith.cmpi ne, %1, %c0_i32_0 : i32
    scf.if %2 {
      %cst_14 = arith.constant 0.000000e+00 : f32
      %23 = vector.broadcast %cst_14 : f32 to vector<8x256xf32>
      %c0_15 = arith.constant 0 : index
      %c0_16 = arith.constant 0 : index
      %24 = vector.load %arg11[%c0_15, %c0_16] : memref<8x256xf32, #tpu.memory_space<vmem>>, vector<8x256xf32>
      tpu.vector_store %arg11[%c0_15, %c0_16], %23 {strides = array<i32>} : memref<8x256xf32, #tpu.memory_space<vmem>>, vector<8x256xf32>,
    } else {
    }
    %c0_i32_1 = arith.constant 0 : i32
    %3 = arith.cmpi eq, %arg1, %c0_i32_1 : i32
    %c0_i32_2 = arith.constant 0 : i32
    %4 = arith.cmpi eq, %arg2, %c0_i32_2 : i32
    %5 = arith.andi %3, %4 : i1
    %6 = arith.extui %5 : i1 to i32
    %c0_i32_3 = arith.constant 0 : i32
    %7 = arith.cmpi ne, %6, %c0_i32_3 : i32
    scf.if %7 {
      %cst_14 = arith.constant 0.000000e+00 : f32
      %23 = vector.broadcast %cst_14 : f32 to vector<8x256xf32>
      %c0_15 = arith.constant 0 : index
      %c0_16 = arith.constant 0 : index
      %24 = vector.load %arg12[%c0_15, %c0_16] : memref<8x256xf32, #tpu.memory_space<vmem>>, vector<8x256xf32>
      tpu.vector_store %arg12[%c0_15, %c0_16], %23 {strides = array<i32>} : memref<8x256xf32, #tpu.memory_space<vmem>>, vector<8x256xf32>,
    } else {
    }
    %c0 = arith.constant 0 : index
    %c0_4 = arith.constant 0 : index
    %8 = vector.load %arg11[%c0, %c0_4] : memref<8x256xf32, #tpu.memory_space<vmem>>, vector<8x256xf32>
    %c0_5 = arith.constant 0 : index
    %c0_6 = arith.constant 0 : index
    %9 = vector.load %arg3[%c0_5, %c0_6] : memref<8x3456xf32, #tpu.memory_space<vmem>>, vector<8x3456xf32>
    %10 = arith.truncf %9 : vector<8x3456xf32> to vector<8x3456xbf16>
    %c0_7 = arith.constant 0 : index
    %c0_8 = arith.constant 0 : index
    %11 = vector.load %arg4[%c0_7, %c0_8] : memref<3456x256xbf16, #tpu.memory_space<vmem>>, vector<3456x256xbf16>
    %cst = arith.constant dense<0.000000e+00> : vector<8x256xf32>
    %12 = tpu.matmul %10, %11, %cst {dimension_numbers = #tpu.dot_dimension_numbers<[1], [0], [0], [1], [0, 0, 1, 1], [], []>} : vector<8x3456xbf16>, vector<3456x256xbf16>, vector<8x256xf32> -> vector<8x256xf32>
    %13 = arith.addf %8, %12 : vector<8x256xf32>
    %c0_9 = arith.constant 0 : index
    %c0_10 = arith.constant 0 : index
    %14 = vector.load %arg11[%c0_9, %c0_10] : memref<8x256xf32, #tpu.memory_space<vmem>>, vector<8x256xf32>
    tpu.vector_store %arg11[%c0_9, %c0_10], %13 {strides = array<i32>} : memref<8x256xf32, #tpu.memory_space<vmem>>, vector<8x256xf32>,
    %c3_i32 = arith.constant 3 : i32
    %15 = arith.cmpi eq, %arg2, %c3_i32 : i32
    %16 = arith.extui %15 : i1 to i32
    %c0_i32_11 = arith.constant 0 : i32
    %17 = arith.cmpi ne, %16, %c0_i32_11 : i32
    scf.if %17 {
      %c0_14 = arith.constant 0 : index
      %c0_15 = arith.constant 0 : index
      %23 = vector.load %arg11[%c0_14, %c0_15] : memref<8x256xf32, #tpu.memory_space<vmem>>, vector<8x256xf32>
      %c0_16 = arith.constant 0 : index
      %c0_17 = arith.constant 0 : index
      %24 = vector.load %arg5[%c0_16, %c0_17] : memref<1x256xf32, #tpu.memory_space<vmem>>, vector<1x256xf32>
      %25 = vector.broadcast %24 : vector<1x256xf32> to vector<8x256xf32>
      %26 = arith.addf %23, %25 : vector<8x256xf32>
      %cst_18 = arith.constant 0.000000e+00 : f32
      %27 = vector.broadcast %cst_18 : f32 to vector<8x256xf32>
      %28 = arith.maximumf %26, %27 : vector<8x256xf32>
      %c0_19 = arith.constant 0 : index
      %c0_20 = arith.constant 0 : index
      %29 = vector.load %arg12[%c0_19, %c0_20] : memref<8x256xf32, #tpu.memory_space<vmem>>, vector<8x256xf32>
      %30 = arith.truncf %28 : vector<8x256xf32> to vector<8x256xbf16>
      %c0_21 = arith.constant 0 : index
      %c0_22 = arith.constant 0 : index
      %31 = vector.load %arg6[%c0_21, %c0_22] : memref<256x256xbf16, #tpu.memory_space<vmem>>, vector<256x256xbf16>
      %cst_23 = arith.constant dense<0.000000e+00> : vector<8x256xf32>
      %32 = tpu.matmul %30, %31, %cst_23 {dimension_numbers = #tpu.dot_dimension_numbers<[1], [0], [0], [1], [0, 0, 1, 1], [], []>} : vector<8x256xbf16>, vector<256x256xbf16>, vector<8x256xf32> -> vector<8x256xf32>
      %33 = arith.addf %29, %32 : vector<8x256xf32>
      %c0_24 = arith.constant 0 : index
      %c0_25 = arith.constant 0 : index
      %34 = vector.load %arg12[%c0_24, %c0_25] : memref<8x256xf32, #tpu.memory_space<vmem>>, vector<8x256xf32>
      tpu.vector_store %arg12[%c0_24, %c0_25], %33 {strides = array<i32>} : memref<8x256xf32, #tpu.memory_space<vmem>>, vector<8x256xf32>,
    } else {
    }
    %c1_i32 = arith.constant 1 : i32
    %18 = arith.cmpi eq, %arg1, %c1_i32 : i32
    %c3_i32_12 = arith.constant 3 : i32
    %19 = arith.cmpi eq, %arg2, %c3_i32_12 : i32
    %20 = arith.andi %18, %19 : i1
    %21 = arith.extui %20 : i1 to i32
    %c0_i32_13 = arith.constant 0 : i32
    %22 = arith.cmpi ne, %21, %c0_i32_13 : i32
    scf.if %22 {
      %c0_14 = arith.constant 0 : index
      %c0_15 = arith.constant 0 : index
      %23 = vector.load %arg12[%c0_14, %c0_15] : memref<8x256xf32, #tpu.memory_space<vmem>>, vector<8x256xf32>
      %c0_16 = arith.constant 0 : index
      %c0_17 = arith.constant 0 : index
      %24 = vector.load %arg7[%c0_16, %c0_17] : memref<1x256xf32, #tpu.memory_space<vmem>>, vector<1x256xf32>
      %25 = vector.broadcast %24 : vector<1x256xf32> to vector<8x256xf32>
      %26 = arith.addf %23, %25 : vector<8x256xf32>
      %cst_18 = arith.constant 0.000000e+00 : f32
      %27 = vector.broadcast %cst_18 : f32 to vector<8x256xf32>
      %28 = arith.maximumf %26, %27 : vector<8x256xf32>
      %c0_19 = arith.constant 0 : index
      %c0_20 = arith.constant 0 : index
      %29 = vector.load %arg8[%c0_19, %c0_20] : memref<256x128xf32, #tpu.memory_space<vmem>>, vector<256x128xf32>
      %cst_21 = arith.constant dense<0.000000e+00> : vector<8x128xf32>
      %30 = tpu.matmul %28, %29, %cst_21 {dimension_numbers = #tpu.dot_dimension_numbers<[1], [0], [0], [1], [0, 0, 1, 1], [], []>} : vector<8x256xf32>, vector<256x128xf32>, vector<8x128xf32> -> vector<8x128xf32>
      %c0_22 = arith.constant 0 : index
      %c0_23 = arith.constant 0 : index
      %31 = vector.load %arg9[%c0_22, %c0_23] : memref<1x128xf32, #tpu.memory_space<vmem>>, vector<1x128xf32>
      %32 = vector.broadcast %31 : vector<1x128xf32> to vector<8x128xf32>
      %33 = arith.addf %30, %32 : vector<8x128xf32>
      %c0_24 = arith.constant 0 : index
      %c0_25 = arith.constant 0 : index
      %34 = vector.load %arg10[%c0_24, %c0_25] : memref<8x128xf32, #tpu.memory_space<vmem>>, vector<8x128xf32>
      tpu.vector_store %arg10[%c0_24, %c0_25], %33 {strides = array<i32>} : memref<8x128xf32, #tpu.memory_space<vmem>>, vector<8x128xf32>,
    } else {
    }
    return
  }
  func.func @transform_0(%arg0: i32, %arg1: i32, %arg2: i32) -> (i32, i32) {
    %c0_i32 = arith.constant 0 : i32
    return %arg0, %arg2 : i32, i32
  }
  func.func @transform_1(%arg0: i32, %arg1: i32, %arg2: i32) -> (i32, i32) {
    %c0_i32 = arith.constant 0 : i32
    return %arg2, %arg1 : i32, i32
  }
  func.func @transform_2(%arg0: i32, %arg1: i32, %arg2: i32) -> (i32, i32) {
    %c0_i32 = arith.constant 0 : i32
    %c0_i32_0 = arith.constant 0 : i32
    return %c0_i32, %arg1 : i32, i32
  }
  func.func @transform_3(%arg0: i32, %arg1: i32, %arg2: i32) -> (i32, i32) {
    %c0_i32 = arith.constant 0 : i32
    %c0_i32_0 = arith.constant 0 : i32
    return %arg1, %c0_i32 : i32, i32
  }
  func.func @transform_4(%arg0: i32, %arg1: i32, %arg2: i32) -> (i32, i32) {
    %c0_i32 = arith.constant 0 : i32
    %c0_i32_0 = arith.constant 0 : i32
    %c0_i32_1 = arith.constant 0 : i32
    return %c0_i32, %c0_i32_0 : i32, i32
  }
  func.func @transform_5(%arg0: i32, %arg1: i32, %arg2: i32) -> (i32, i32) {
    %c0_i32 = arith.constant 0 : i32
    %c0_i32_0 = arith.constant 0 : i32
    %c0_i32_1 = arith.constant 0 : i32
    return %c0_i32, %c0_i32_0 : i32, i32
  }
  func.func @transform_6(%arg0: i32, %arg1: i32, %arg2: i32) -> (i32, i32) {
    %c0_i32 = arith.constant 0 : i32
    %c0_i32_0 = arith.constant 0 : i32
    %c0_i32_1 = arith.constant 0 : i32
    return %c0_i32, %c0_i32_0 : i32, i32
  }
  func.func @transform_7(%arg0: i32, %arg1: i32, %arg2: i32) -> (i32, i32) {
    %c0_i32 = arith.constant 0 : i32
    %c0_i32_0 = arith.constant 0 : i32
    return %arg0, %c0_i32 : i32, i32
  }
}

</mosaic_0001>

<bundles_post_ra>
// kernel: mlp_forward.1
= control target key start
LH: loop header
LB: loop body
LE: loop exit
PB: predicated region body
PF: predicated region fallthrough
CT: control target
= control target key end

     0   :  { %s6779_s0 = inlined_call_operand.vmem [shape: f32[8,13824], index: 0, kind: input, shape index: {}]   ;;  %s6780_s1 = inlined_call_operand.hbm [shape: bf16[13824,512], index: 1, kind: input, shape index: {}]   ;;  %s6781_s2 = inlined_call_operand.hbm [shape: f32[1,512], index: 2, kind: input, shape index: {}]   ;;  %s6782_s3 = inlined_call_operand.hbm [shape: bf16[512,256], index: 3, kind: input, shape index: {}]   ;;  %s6783_s4 = inlined_call_operand.hbm [shape: f32[1,256], index: 4, kind: input, shape index: {}]   ;;  %s6784_s5 = inlined_call_operand.hbm [shape: f32[256,128], index: 5, kind: input, shape index: {}]   ;;  %s6785_s6 = inlined_call_operand.hbm [shape: f32[1,128], index: 6, kind: input, shape index: {}]   ;;  %s6786_s7 = inlined_call_operand.vmem [shape: f32[8,128], index: 7, kind: output, shape index: {}]  }
   0x1   :  { %6806 = sst [smem:[#allocation28_spill]] %s6779_s0 }
   0x2   :  { %6807 = sst [smem:[#allocation29_spill]] %s6781_s2 }
   0x3   :  { %6808 = sst [smem:[#allocation30_spill]] %s6783_s4 }
   0x4   :  { %6809 = sst [smem:[#allocation31_spill]] %s6784_s5 }
   0x5   :  { %6810 = sst [smem:[#allocation32_spill]] %s6786_s7 }
   0x6   :  { %12 = vsyncpa [#allocation5], 0 }
   0x7   :  { %14 = vsyncpa [#allocation5 + $0x1], 0 }
   0x8   :  { %15 = vsyncpa [#allocation7], 0 }
   0x9   :  { %17 = vsyncpa [#allocation7 + $0x1], 0 }
   0xa   :  { %18 = vsyncpa [#allocation10], 0 }
   0xb   :  { %19 = vsyncpa [#allocation13], 0  ;;  %s5972_s24 = smov 0   ;;  %s5974_s25 = smov 0  }
   0xc   :  { %s5976_s26 = smov 0   ;;  %s5978_s27 = smov 0  }
   0xd   :  { %s5980_s28 = smov 0   ;;  %s5982_s29 = smov 0  }
   0xe   :  { %s5984_s30 = smov 0   ;;  %s5986_s8 = smov 0  }
   0xf   :  { %s5988_s9 = smov 0   ;;  %s5990_s10 = smov 0  }
  0x10   :  { %s5992_s11 = smov 0  }
  0x11 LB: > { %6811 = sst [smem:[#allocation18_spill]] %s5886_s26  ;;  %s6787_s12 = sadd.s32 4294967295, %s5918_s11   ;;  %s5918_s11 = sphi %s5992_s11, %s25_s11   ;;  %s5914_s10 = sphi %s5990_s10, %s6862_s10   ;;  %s5910_s9 = sphi %s5988_s9, %s6861_s9   ;;  %s5906_s8 = sphi %s5986_s8, %s6860_s8   ;;  %s5902_s30 = sphi %s5984_s30, %s6859_s30   ;;  %s5898_s29 = sphi %s5982_s29, %s6852_s29   ;;  %s5894_s28 = sphi %s5980_s28, %s6858_s28   ;;  %s5890_s27 = sphi %s5978_s27, %s6857_s27   ;;  %s5886_s26 = sphi %s5976_s26, %s6850_s26   ;;  %s5882_s25 = sphi %s5974_s25, %s6856_s25   ;;  %s5878_s24 = sphi %s5972_s24, %s6855_s24  }
  0x12   : > { %6812 = sst [smem:[#allocation19_spill]] %s5898_s29  ;;  %p94_p0 = scmp.ne.s32.totalorder %s5894_s28, %s5890_s27 }
  0x13   : > { %6813 = sst [smem:[#allocation20_spill]] %s5902_s30  ;;  %p6029_p1 = scmp.eq.s32.totalorder %s6787_s12, 0 }
  0x14   : > { %6814 = sst [smem:[#allocation21_spill]] %s5906_s8  ;;  %p4283_p2 = scmp.ge.s32.totalorder %s5918_s11, 1 }
  0x15   : > { %s6815_s13 = scalar_select %p6029_p1, 1, 0 }
  0x16   : > { %p246_p3 = scmp.lt.s32.totalorder %s5918_s11, 9  ;;  %p6037_p4 = por %p6029_p1, %p94_p0 }
  0x17   : > { %6816 = sst [smem:[#allocation22_spill]] %s6815_s13  ;;  %s5920_s16 = smov [#allocation9]  }
  0x18   : > { %p6041_p5 = pnand %p4283_p2, %p246_p3  ;;  %s259_s17 = sshll.u32 %s5920_s16, 4  ;;  %s260_s17 = int_to_ptr.vmem [resolvable:$true] %s259_s17 }
  0x19   : > { %s5665_s19 = scalar_lea.vmem %s260_s17, 32  ;;  %p5673_p12 = scmp.lt.s32.totalorder %s260_s17, %s260_s17 }
  0x1a   : > { %p4834_p6 = pneg %p6041_p5  ;;  %p5666_p9 = scmp.ne.s32.totalorder %s260_s17, %s5665_s19 }
  0x1b   : > { %p5674_p13 = scmp.lt.s32.totalorder %s5665_s19, %s5665_s19 }
  0x1c   : > { %p6049_p7 = pnand %p4834_p6, %p6029_p1 }
  0x1d   : > { %p5675_p0 = por %p5674_p13, %p5673_p12 }
  0x1e   : > { %p6788_p8 = pneg %p6049_p7 }
  0x20   : > { %p5668_p10 = pnand %p5666_p9, %p6788_p8 }
  0x22   : > { %p5669_p11 = pneg %p5668_p10 }
  0x24   : > { %p5676_p2 = pnand %p5675_p0, %p5669_p11 }
  0x26   : > { %5679 = shalt.err (!%p5676_p2)
}
  0x27   : > { %s6820_s4 = sld [smem:[#allocation30_spill]]  ;;  %s37_s22 = sadd.s32 1, %s5910_s9 }
  0x28   : > { %p38_p3 = scmp.ge.s32.totalorder %s37_s22, 4  ;;  %s40_s23 = sadd.s32 1, %s5914_s10 }
  0x29   : > { %s81_s27 = sadd.s32 1, %s5898_s29  ;;  %p88_p6 = scmp.ne.s32.totalorder %s5898_s29, %s5894_s28 }
  0x2a   : > { %s6864_s22 = smov (%p38_p3, %s37_s22), 0  ;;  %s6866_s23 = smov (!%p38_p3, %s40_s23), %s5914_s10 }
  0x2b   : > { %6821 = sst [smem:[#allocation23_spill]] %s6864_s22  ;;  %s76_s16 = ssub.s32 %s5910_s9, %s6864_s22 }
  0x2c   : > { %p89_p9 = scmp.eq.s32.totalorder %s5918_s11, 0  ;;  %p42_p10 = scmp.ge.s32.totalorder %s6866_s23, 2 }
  0x2d   : > { %4837 = dma.hbm_to_vmem [thread:$0]  (!%p6049_p7), %s6820_s4, 32, %s260_s17, [#allocation10]  }
  0x2e   : > { %s107_s17 = sadd.s32 1, %s5886_s26  ;;  %p6075_p11 = por %p89_p9, %p88_p6 }
  0x2f   : > { %p114_p12 = scmp.ne.s32.totalorder %s5886_s26, %s5882_s25  ;;  %s6868_s23 = smov (%p42_p10, %s6866_s23), 0 }
  0x30   : > { %6823 = sst [smem:[#allocation24_spill]] %s6868_s23  ;;  %p120_p0 = scmp.ne.s32.totalorder %s5882_s25, %s5878_s24 }
  0x31   : > { %p6083_p13 = por %p114_p12, %p89_p9  ;;  %s77_s21 = ssub.s32 %s5914_s10, %s6868_s23 }
  0x32   : > { %p4857_p2 = scmp.lt.s32.totalorder %s5918_s11, 8  ;;  %s78_s12 = sor.u32 %s77_s21, %s76_s16 }
  0x33   : > { %p105_p3 = scmp.eq.s32.totalorder %s77_s21, 0  ;;  %p79_p6 = scmp.eq.s32.totalorder %s78_s12, 0 }
  0x34   : > { %p6094_p8 = por %p120_p0, %p6029_p1  ;;  %p6108_p9 = pnand %p4857_p2, %p6075_p11 }
  0x35   : > { %s6099_s22 = scalar_select %p105_p3, %s5886_s26, %s107_s17  }
  0x36   : > { %s6825_s4 = scalar_select %p6094_p8, 1, 0 }
  0x37   : > { %6827 = sst [smem:[#allocation26_spill]] %s6099_s22  ;;  %s331_s23 = sand.u32 1, %s5918_s11  }
  0x38   : > { %6826 = sst [smem:[#allocation25_spill]] %s6825_s4  ;;  %s333_s8 = sand.u32 1, %s5886_s26  }
  0x39   : > { %s6102_s7 = scalar_select %p79_p6, %s5898_s29, %s81_s27  }
  0x3a   : > { %s4291_s16 = sshll.u32 %s333_s8, 1  ;;  %s4776_s21 = sshll.u32 %s5914_s10, 5 }
  0x3b   : > { %6828 = sst [smem:[#allocation27_spill]] %s6102_s7  ;;  %s335_s13 = scalar_lea.vmem [#allocation6], %s4291_s16 }
  0x3c   : > { %s6830_s2 = sld [smem:[#allocation29_spill]]  ;;  %s343_s4 = sshll.u32 %s335_s13, 4  ;;  %s344_s4 = int_to_ptr.vmem [resolvable:$true] %s343_s4 }
  0x3d   : > { %p6122_p10 = pnand %p4857_p2, %p6083_p13  ;;  %s4294_s17 = sshll.u32 %s333_s8, 8 }
  0x3e   : > { %s6126_s19 = scalar_lea.sflag [#allocation7], %s331_s23  ;;  %s5693_s7 = scalar_lea.vmem %s344_s4, 32 }
  0x3f   : > { %p6799_p11 = pneg %p6122_p10  ;;  %p5694_p12 = scmp.ne.s32.totalorder %s344_s4, %s5693_s7 }
  0x40   : > { %s5921_s0 = smov [#allocation6]  }
  0x41   : > { %p5696_p0 = pnand %p5694_p12, %p6799_p11  ;;  %s5698_s13 = sshll.u32 %s5921_s0, 4  ;;  %s5699_s13 = int_to_ptr.vmem [resolvable:$false] %s5698_s13 }
  0x42   : > { %s341_s30 = scalar_lea.hbm %s6830_s2, %s4776_s21  ;;  %s5700_s20 = scalar_lea.vmem %s5699_s13, 64 }
  0x43   : > { %p5697_p3 = pneg %p5696_p0  ;;  %p5701_p13 = scmp.lt.s32.totalorder %s344_s4, %s5699_s13 }
  0x44   : > { %p5702_p2 = scmp.lt.s32.totalorder %s5700_s20, %s5693_s7 }
  0x46   : > { %p5703_p6 = por %p5702_p2, %p5701_p13 }
  0x48   : > { %p5704_p1 = pnand %p5703_p6, %p5697_p3 }
  0x4a   : > { %5707 = shalt.err (!%p5704_p1)
}
  0x4b   : > { %4850 = dma.hbm_to_vmem [thread:$0]  (!%p6122_p10), %s341_s30, 32, %s344_s4, %s6126_s19  }
  0x4c   : > { %s354_s8 = scalar_lea.vmem [#allocation8], %s4294_s17  ;;  %s5922_s16 = smov [#allocation11]  }
  0x4d   : > { %s362_s23 = sshll.u32 %s354_s8, 4  ;;  %s269_s21 = sshll.u32 %s5922_s16, 4  ;;  %s6136_s23 = int_to_ptr.vmem [resolvable:$true] %s362_s23  ;;  %s270_s21 = int_to_ptr.vmem [resolvable:$true] %s269_s21 }
  0x4e   : > { %s5719_s12 = scalar_lea.vmem %s270_s21, 4096  ;;  %p6832_p0 = pneg %p6049_p7 }
  0x4f   : > { %p5720_p12 = scmp.ne.s32.totalorder %s270_s21, %s5719_s12  ;;  %p5727_p3 = scmp.lt.s32.totalorder %s270_s21, %s270_s21 }
  0x50   : > { %p5728_p1 = scmp.lt.s32.totalorder %s5719_s12, %s5719_s12 }
  0x51   : > { %p5722_p11 = pnand %p5720_p12, %p6832_p0 }
  0x52   : > { %p5729_p2 = por %p5728_p1, %p5727_p3 }
  0x53   : > { %p5723_p13 = pneg %p5722_p11 }
  0x55   : > { %p5730_p6 = pnand %p5729_p2, %p5723_p13 }
  0x57   : > { %5733 = shalt.err (!%p5730_p6)
}
  0x58   : > { %s6800_s7 = smov 128   ;;  %s6802_s4 = smov 8  }
  0x59   : > { %s6833_s5 = sld [smem:[#allocation31_spill]]  ;;  %s307_s0 = sand.u32 1, %s5898_s29  }
  0x5a   : > { %s5925_s13 = smov [#allocation12]   ;;  %s4814_s8 = smul.u32 3456, %s307_s0 }
  0x5b   : > { %s283_s20 = sshll.u32 %s5925_s13, 4  ;;  %p6834_p12 = pmov %p6832_p0  ;;  %s284_s20 = int_to_ptr.vmem [resolvable:$true] %s283_s20 }
  0x5c   : > { %s5745_s16 = scalar_lea.vmem %s284_s20, 16  ;;  %s5752_s12 = scalar_lea.vmem %s284_s20, 32 }
  0x5d   : > { %p5746_p11 = scmp.ne.s32.totalorder %s284_s20, %s5745_s16  ;;  %p5753_p3 = scmp.lt.s32.totalorder %s284_s20, %s284_s20 }
  0x5e   : > { %p5754_p1 = scmp.lt.s32.totalorder %s5752_s12, %s5745_s16 }
  0x5f   : > { %4840 = dma.hbm_to_vmem [thread:$0]  (!%p6049_p7), %s6833_s5, 4096, %s270_s21, [#allocation10], %s6800_s7, %s6800_s7, %s6802_s4  }
  0x60   : > { %p5748_p0 = pnand %p5746_p11, %p6834_p12  ;;  %p5755_p2 = por %p5754_p1, %p5753_p3 }
  0x62   : > { %p5749_p13 = pneg %p5748_p0 }
  0x64   : > { %p5756_p6 = pnand %p5755_p2, %p5749_p13 }
  0x66   : > { %5759 = shalt.err (!%p5756_p6)
}
  0x67   : > { %4843 = dma.hbm_to_vmem [thread:$0]  (!%p6049_p7), %s6785_s6, 16, %s284_s20, [#allocation13]  }
  0x68   : > { %s4288_s17 = sshll.u32 %s5914_s10, 1  ;;  %s4775_s13 = smul.u32 1728, %s5910_s9 }
  0x69   : > { %s311_s7 = scalar_lea.vmem [#allocation4], %s4814_s8  ;;  %s4778_s16 = sshll.u32 %s5914_s10, 12 }
  0x6a   : > { %s321_s4 = sshll.u32 %s311_s7, 4  ;;  %s318_s2 = sadd.s32 %s4775_s13, %s4288_s17  ;;  %s322_s4 = int_to_ptr.vmem [resolvable:$true] %s321_s4 }
  0x6b   : > { %s4290_s12 = sshll.u32 %s318_s2, 6  ;;  %s6164_s18 = scalar_lea.hbm %s6782_s3, %s4778_s16 }
  0x6c   : > { %s320_s30 = scalar_lea.hbm %s6780_s1, %s4290_s12  ;;  %s308_s26 = scalar_lea.sflag [#allocation5], %s307_s0 }
  0x6d   : > { %p5762_p7 = pneg %p6108_p9  ;;  %s5773_s20 = scalar_lea.vmem %s322_s4, 55296 }
  0x6e   : > { %p5774_p11 = scmp.ne.s32.totalorder %s322_s4, %s5773_s20  ;;  %s5926_s7 = smov [#allocation4]  }
  0x6f   : > { %s5778_s8 = sshll.u32 %s5926_s7, 4  ;;  %s5779_s8 = int_to_ptr.vmem [resolvable:$false] %s5778_s8 }
  0x70   : > { %p5776_p12 = pnand %p5774_p11, %p5762_p7  ;;  %s5780_s2 = scalar_lea.vmem %s5779_s8, 110592 }
  0x71   : > { %p5781_p13 = scmp.lt.s32.totalorder %s322_s4, %s5779_s8  ;;  %p5782_p3 = scmp.lt.s32.totalorder %s5780_s2, %s5773_s20 }
  0x72   : > { %p5777_p0 = pneg %p5776_p12 }
  0x73   : > { %p5783_p1 = por %p5782_p3, %p5781_p13 }
  0x75   : > { %p5784_p2 = pnand %p5783_p1, %p5777_p0 }
  0x77   : > { %5787 = shalt.err (!%p5784_p2)
}
  0x78   : > { %s5927_s5 = smov 256   ;;  %s6835_s29 = smov 8  }
  0x79   : > { %s6836_s22 = smov 128   ;;  %s5801_s0 = scalar_lea.vmem %s6136_s23, 4096 }
  0x7a   : > { %4847 = dma.hbm_to_vmem [thread:$0]  (!%p6108_p9), %s320_s30, 55296, %s322_s4, %s308_s26, %s5927_s5, %s6836_s22, %s6835_s29  }
  0x7b   : > { %p5802_p6 = scmp.ne.s32.totalorder %s6136_s23, %s5801_s0  ;;  %p6837_p7 = pneg %p6122_p10 }
  0x7c   : > { %s5928_s17 = smov [#allocation8]  }
  0x7d   : > { %p5804_p11 = pnand %p5802_p6, %p6837_p7  ;;  %s5806_s13 = sshll.u32 %s5928_s17, 4  ;;  %s5807_s13 = int_to_ptr.vmem [resolvable:$false] %s5806_s13 }
  0x7e   : > { %s5808_s16 = scalar_lea.vmem %s5807_s13, 8192  ;;  %p5809_p0 = scmp.lt.s32.totalorder %s6136_s23, %s5807_s13 }
  0x7f   : > { %p5805_p12 = pneg %p5804_p11  ;;  %p5810_p13 = scmp.lt.s32.totalorder %s5808_s16, %s5801_s0 }
  0x81   : > { %p5811_p3 = por %p5810_p13, %p5809_p0 }
  0x83   : > { %p5812_p1 = pnand %p5811_p3, %p5805_p12 }
  0x85   : > { %5815 = shalt.err (!%p5812_p1)
}
  0x86   : > { %4853 = dma.hbm_to_vmem [thread:$0]  (!%p6122_p10), %s6164_s18, 4096, %s6136_s23, %s6126_s19, %s6836_s22, %s6836_s22, %s6835_s29  }
  0x87   : > { %374 = sbr.rel (%p6041_p5) target bundleno = 1352 (0x548), region = 48  ;;  %s376_s26 = sand.u32 (!%p6041_p5), 1, %s5894_s28  }
  0x88   : > { %s4815_s24 = smul.u32 (!%p6041_p5), 3456, %s376_s26  ;;  %s377_s4 = scalar_lea.sflag (!%p6041_p5), [#allocation5], %s376_s26 }
  0x8a   : > { %s6192_s12 = scalar_lea.vmem (!%p6041_p5), [#allocation4], %s4815_s24 }
  0x8c   : > { %5861 = dma.done.wait (%p6037_p4), %s377_s4, 55296  }
  0x8d   : > { %5863 = vsyncadd (%p6037_p4), %s377_s4, 4294912000  ;;  %s6838_s27 = sadd.s32 4294967295, %s5918_s11   ;;  %s387_s23 = sand.u32 1, %s5882_s25  }
  0x8e   : > { %s385_s19 = sand.u32 1, %s6838_s27   ;;  %s6201_s15 = sshll.u32 %s387_s23, 1 }
  0x8f   : > { %s386_s18 = scalar_lea.sflag [#allocation7], %s385_s19  ;;  %s389_s30 = scalar_lea.vmem [#allocation6], %s6201_s15 }
  0x90   : > { %5865 = dma.done.wait (%p6094_p8), %s386_s18, 4128  }
  0x91   : > { %5867 = vsyncadd (%p6094_p8), %s386_s18, 4294963168  ;;  %s6840_s20 = sld [smem:[#allocation22_spill]]  ;;  %s4300_s7 = sshll.u32 %s387_s23, 8 }
  0x92   : > { %s6208_s14 = scalar_lea.vmem [#allocation8], %s4300_s7 }
  0x97   : > { %p6841_p4 = scmp.ne.s32.totalorder %s6840_s20, 0 }
  0x99   : > { %5869 = dma.done.wait (%p6841_p4), [#allocation10], 4128  }
  0x9a   : > { %5871 = vsyncadd (%p6841_p4), [#allocation10], 4294963168 }
  0x9b   : > { %5873 = dma.done.wait (%p6841_p4), [#allocation13], 16  }
  0x9c   : > { %5875 = vsyncadd (%p6841_p4), [#allocation13], 4294967280  ;;  %s6842_s8 = sld [smem:[#allocation20_spill]] }
  0x9d   : > { %s6843_s0 = sld [smem:[#allocation28_spill]] }
  0xa2   : > { %s459_s2 = smul.u32 27, %s6842_s8  ;;  %p478_p5 = scmp.eq.s32.totalorder %s6842_s8, 0 }
  0xa3   : > { %p4305_p9 = scmp.ne.s32.totalorder %s6842_s8, 0 }
  0xa4   : > { %p462_p8 = scmp.lt.s32.totalorder %s459_s2, 107 }
  0xa5   : > { %481 = sbr.rel (%p4305_p9) target bundleno = 172 (0xac), region = 76 }
  0xa6   : > { %s6870_s2 = smov (!%p462_p8, %s459_s2), 107 }
  0xa7   : > { %s4304_s5 = sshll.u32 %s6870_s2, 3 }
  0xa8   : > { %s6223_s17 = scalar_lea.vmem %s6843_s0, %s4304_s5 }
  0xaa   : > { %v5929_v0 = vmov 0.0  }
  0xab   : > { %482 = vst [vmem:[#allocation2] sm:$0xff] %v5929_v0  ;;  %483 = vst [vmem:[#allocation2 + $0x8] sm:$0xff] %v5929_v0 }
  0xac PF: > { %s6844_s13 = sld [smem:[#allocation21_spill]] }
  0xb2   : > { %p484_p10 = scmp.eq.s32.totalorder %s6844_s13, 0 }
  0xb4   : > { %p485_p2 = pnand %p484_p10, %p478_p5 }
  0xb6   : > { %488 = sbr.rel (%p485_p2) target bundleno = 189 (0xbd), region = 80 }
  0xbb   : > { %v5930_v1 = vmov 0.0  }
  0xbc   : > { %489 = vst [vmem:[#allocation3 + $0x8] sm:$0xff] %v5930_v1  ;;  %490 = vst [vmem:[#allocation3] sm:$0xff] %v5930_v1 }
  0xbd PF: > { %v4958_v2 = vld [vmem:[%s6192_s12 + $0x74] ss:$8 sps:$4 sm:$0xff]   ;;  %v4962_v4 = vld [vmem:[%s6192_s12 + $0x70] ss:$8 sps:$4 sm:$0xff]   ;;  %v4964_v6 = vld [vmem:[%s6192_s12 + $0x64] ss:$8 sps:$4 sm:$0xff]  }
  0xbe   : > { %v4960_v3 = vld [vmem:[%s6192_s12 + $0x174] ss:$8 sps:$4 sm:$0xff]   ;;  %3139 = vmatprep.subr.bf16.mxu0 %v4958_v2  ;;  %v4963_v5 = vld [vmem:[%s6192_s12 + $0x170] ss:$8 sps:$4 sm:$0xff]   ;;  %v4966_v7 = vld [vmem:[%s6192_s12 + $0x164] ss:$8 sps:$4 sm:$0xff]  }
  0xbf   : > { %3180 = vmatprep.subr.bf16.mxu1 %v4960_v3  ;;  %3140 = vmatpush1.bf16.msra.mxu0 %v4962_v4  ;;  %v4968_v8 = vld [vmem:[%s6192_s12 + $0x60] ss:$8 sps:$4 sm:$0xff]   ;;  %v4970_v10 = vld [vmem:[%s6192_s12 + $0x54] ss:$8 sps:$4 sm:$0xff]   ;;  %v4974_v12 = vld [vmem:[%s6192_s12 + $0x50] ss:$8 sps:$4 sm:$0xff]  }
  0xc0   : > { %3181 = vmatpush1.bf16.msra.mxu1 %v4963_v5  ;;  %3141 = vmatprep.subr.bf16.mxu0 %v4964_v6  ;;  %v4969_v9 = vld [vmem:[%s6192_s12 + $0x160] ss:$8 sps:$4 sm:$0xff]   ;;  %v4972_v11 = vld [vmem:[%s6192_s12 + $0x154] ss:$8 sps:$4 sm:$0xff]   ;;  %v4975_v13 = vld [vmem:[%s6192_s12 + $0x150] ss:$8 sps:$4 sm:$0xff]  }
  0xc1   : > { %3182 = vmatprep.subr.bf16.mxu1 %v4966_v7  ;;  %v4976_v14 = vld [vmem:[%s6192_s12 + $0x44] ss:$8 sps:$4 sm:$0xff]   ;;  %v4980_v16 = vld [vmem:[%s6192_s12 + $0x40] ss:$8 sps:$4 sm:$0xff]   ;;  %v4982_v18 = vld [vmem:[%s6192_s12 + $0x34] ss:$8 sps:$4 sm:$0xff]  }
  0xc2   : > { %v4978_v15 = vld [vmem:[%s6192_s12 + $0x144] ss:$8 sps:$4 sm:$0xff]   ;;  %v4981_v17 = vld [vmem:[%s6192_s12 + $0x140] ss:$8 sps:$4 sm:$0xff]   ;;  %v4984_v19 = vld [vmem:[%s6192_s12 + $0x134] ss:$8 sps:$4 sm:$0xff]  }
  0xc3   : > { %3142 = vmatpush1.bf16.msra.mxu0 %v4968_v8  ;;  %v4986_v20 = vld [vmem:[%s6192_s12 + $0x30] ss:$8 sps:$4 sm:$0xff]   ;;  %v4988_v22 = vld [vmem:[%s6192_s12 + $0x24] ss:$8 sps:$4 sm:$0xff]   ;;  %v4992_v24 = vld [vmem:[%s6192_s12 + $0x20] ss:$8 sps:$4 sm:$0xff]  }
  0xc4   : > { %3183 = vmatpush1.bf16.msra.mxu1 %v4969_v9  ;;  %3143 = vmatprep.subr.bf16.mxu0 %v4970_v10  ;;  %v4987_v21 = vld [vmem:[%s6192_s12 + $0x130] ss:$8 sps:$4 sm:$0xff]   ;;  %v4990_v23 = vld [vmem:[%s6192_s12 + $0x124] ss:$8 sps:$4 sm:$0xff]   ;;  %v4993_v25 = vld [vmem:[%s6192_s12 + $0x120] ss:$8 sps:$4 sm:$0xff]  }
  0xc5   : > { %3184 = vmatprep.subr.bf16.mxu1 %v4972_v11  ;;  %v4994_v26 = vld [vmem:[%s6192_s12 + $0x14] ss:$8 sps:$4 sm:$0xff]   ;;  %v4998_v28 = vld [vmem:[%s6192_s12 + $0x10] ss:$8 sps:$4 sm:$0xff]   ;;  %v5000_v30 = vld [vmem:[%s6192_s12 + $0x4] ss:$8 sps:$4 sm:$0xff]  }
  0xc6   : > { %v4996_v27 = vld [vmem:[%s6192_s12 + $0x114] ss:$8 sps:$4 sm:$0xff]   ;;  %v4999_v29 = vld [vmem:[%s6192_s12 + $0x110] ss:$8 sps:$4 sm:$0xff]   ;;  %v5002_v31 = vld [vmem:[%s6192_s12 + $0x104] ss:$8 sps:$4 sm:$0xff]  }
  0xc7   : > { %3144 = vmatpush1.bf16.msra.mxu0 %v4974_v12  ;;  %v5004_v32 = vld [vmem:[%s6192_s12] ss:$8 sps:$4 sm:$0xff]   ;;  %v5006_v34 = vld [vmem:[%s6192_s12 + $0xf4] ss:$8 sps:$4 sm:$0xff]   ;;  %v5010_v36 = vld [vmem:[%s6192_s12 + $0xf0] ss:$8 sps:$4 sm:$0xff]  }
  0xc8   : > { %3185 = vmatpush1.bf16.msra.mxu1 %v4975_v13  ;;  %3145 = vmatprep.subr.bf16.mxu0 %v4976_v14  ;;  %v5005_v33 = vld [vmem:[%s6192_s12 + $0x100] ss:$8 sps:$4 sm:$0xff]   ;;  %v5008_v35 = vld [vmem:[%s6192_s12 + $0x1f4] ss:$8 sps:$4 sm:$0xff]   ;;  %v5011_v37 = vld [vmem:[%s6192_s12 + $0x1f0] ss:$8 sps:$4 sm:$0xff]  }
  0xc9   : > { %3186 = vmatprep.subr.bf16.mxu1 %v4978_v15  ;;  %v5012_v38 = vld [vmem:[%s6192_s12 + $0xe4] ss:$8 sps:$4 sm:$0xff]   ;;  %v5016_v40 = vld [vmem:[%s6192_s12 + $0xe0] ss:$8 sps:$4 sm:$0xff]   ;;  %v5018_v42 = vld [vmem:[%s6192_s12 + $0xd4] ss:$8 sps:$4 sm:$0xff]  }
  0xca   : > { %v5014_v39 = vld [vmem:[%s6192_s12 + $0x1e4] ss:$8 sps:$4 sm:$0xff]   ;;  %v5017_v41 = vld [vmem:[%s6192_s12 + $0x1e0] ss:$8 sps:$4 sm:$0xff]   ;;  %v5020_v43 = vld [vmem:[%s6192_s12 + $0x1d4] ss:$8 sps:$4 sm:$0xff]  }
  0xcb   : > { %3146 = vmatpush1.bf16.msra.mxu0 %v4980_v16  ;;  %v5022_v44 = vld [vmem:[%s6192_s12 + $0xd0] ss:$8 sps:$4 sm:$0xff]   ;;  %v5024_v46 = vld [vmem:[%s6192_s12 + $0xc4] ss:$8 sps:$4 sm:$0xff]   ;;  %v5028_v49 = vld [vmem:[%s6192_s12 + $0xc0] ss:$8 sps:$4 sm:$0xff]  }
  0xcc   : > { %3187 = vmatpush1.bf16.msra.mxu1 %v4981_v17  ;;  %3147 = vmatprep.subr.bf16.mxu0 %v4982_v18  ;;  %v5023_v45 = vld [vmem:[%s6192_s12 + $0x1d0] ss:$8 sps:$4 sm:$0xff]   ;;  %v5026_v47 = vld [vmem:[%s6192_s12 + $0x1c4] ss:$8 sps:$4 sm:$0xff]   ;;  %v5029_v50 = vld [vmem:[%s6192_s12 + $0x1c0] ss:$8 sps:$4 sm:$0xff]  }
  0xcd   : > { %3188 = vmatprep.subr.bf16.mxu1 %v4984_v19  ;;  %v494_v48 = vld [vmem:[%s6223_s17 + $0x8] sm:$0xff]  ;;  %v496_v52 = vld [vmem:[%s6223_s17 + $0x18] sm:$0xff]  ;;  %v493_v6 = vld [vmem:[%s6223_s17] sm:$0xff]  ;;  %s6845_s16 = sld [smem:[#allocation20_spill]] }
  0xce   : > { %v521_v51 = vpack.c.bf16 %v494_v48, %v494_v48  ;;  %v5030_v53 = vld [vmem:[%s6192_s12 + $0xb4] ss:$8 sps:$4 sm:$0xff]   ;;  %v523_v54 = vpack.c.bf16 %v496_v52, %v496_v52  ;;  %v5034_v56 = vld [vmem:[%s6192_s12 + $0xb0] ss:$8 sps:$4 sm:$0xff]   ;;  %v5036_v58 = vld [vmem:[%s6192_s12 + $0xa4] ss:$8 sps:$4 sm:$0xff]   ;;  %v520_v10 = vpack.c.bf16 %v493_v6, %v493_v6 }
  0xcf   : > { %3148 = vmatpush1.bf16.msra.mxu0 %v4986_v20  ;;  %v5032_v55 = vld [vmem:[%s6192_s12 + $0x1b4] ss:$8 sps:$4 sm:$0xff]   ;;  %v5035_v57 = vld [vmem:[%s6192_s12 + $0x1b0] ss:$8 sps:$4 sm:$0xff]   ;;  %v5038_v59 = vld [vmem:[%s6192_s12 + $0x1a4] ss:$8 sps:$4 sm:$0xff]  }
  0xd0   : > { %3189 = vmatpush1.bf16.msra.mxu1 %v4987_v21  ;;  %3149 = vmatprep.subr.bf16.mxu0 %v4988_v22  ;;  %v5040_v60 = vld [vmem:[%s6192_s12 + $0xa0] ss:$8 sps:$4 sm:$0xff]   ;;  %v5042_v62 = vld [vmem:[%s6192_s12 + $0x94] ss:$8 sps:$4 sm:$0xff]   ;;  %v5046_v0 = vld [vmem:[%s6192_s12 + $0x90] ss:$8 sps:$4 sm:$0xff]  }
  0xd1   : > { %3190 = vmatprep.subr.bf16.mxu1 %v4990_v23  ;;  %3171 = vmatprep.mubr.bf16.mxu0 %v521_v51  ;;  %v5041_v61 = vld [vmem:[%s6192_s12 + $0x1a0] ss:$8 sps:$4 sm:$0xff]   ;;  %v5044_v63 = vld [vmem:[%s6192_s12 + $0x194] ss:$8 sps:$4 sm:$0xff]   ;;  %v5047_v1 = vld [vmem:[%s6192_s12 + $0x190] ss:$8 sps:$4 sm:$0xff]  }
  0xd2   : > { %3212 = vmatprep.mubr.bf16.mxu1 %v523_v54  ;;  %v5048_v2 = vld [vmem:[%s6192_s12 + $0x84] ss:$8 sps:$4 sm:$0xff]   ;;  %v5052_v4 = vld [vmem:[%s6192_s12 + $0x80] ss:$8 sps:$4 sm:$0xff]   ;;  %v495_v7 = vld [vmem:[%s6223_s17 + $0x10] sm:$0xff] }
  0xd3   : > { %3150 = vmatpush1.bf16.msra.mxu0 %v4992_v24  ;;  %v5050_v3 = vld [vmem:[%s6192_s12 + $0x184] ss:$8 sps:$4 sm:$0xff]   ;;  %v5053_v5 = vld [vmem:[%s6192_s12 + $0x180] ss:$8 sps:$4 sm:$0xff]   ;;  %v5056_v8 = vld [vmem:[%s6192_s12 + $0x274] ss:$8 sps:$4 sm:$0xff]   ;;  %v522_v11 = vpack.c.bf16 %v495_v7, %v495_v7 }
  0xd4   : > { %3191 = vmatpush1.bf16.msra.mxu1 %v4993_v25  ;;  %3151 = vmatprep.subr.bf16.mxu0 %v4994_v26  ;;  %v5059_v9 = vld [vmem:[%s6192_s12 + $0x374] ss:$8 sps:$4 sm:$0xff]   ;;  %v5054_v12 = vld [vmem:[%s6192_s12 + $0x270] ss:$8 sps:$4 sm:$0xff]   ;;  %v5062_v14 = vld [vmem:[%s6192_s12 + $0x264] ss:$8 sps:$4 sm:$0xff]  }
  0xd5   : > { %3192 = vmatprep.subr.bf16.mxu1 %v4996_v27  ;;  %v5057_v13 = vld [vmem:[%s6192_s12 + $0x370] ss:$8 sps:$4 sm:$0xff]   ;;  %v5065_v15 = vld [vmem:[%s6192_s12 + $0x364] ss:$8 sps:$4 sm:$0xff]   ;;  %v5060_v16 = vld [vmem:[%s6192_s12 + $0x260] ss:$8 sps:$4 sm:$0xff]  }
  0xd6   : > { %v5063_v17 = vld [vmem:[%s6192_s12 + $0x360] ss:$8 sps:$4 sm:$0xff]   ;;  %v5068_v18 = vld [vmem:[%s6192_s12 + $0x254] ss:$8 sps:$4 sm:$0xff]   ;;  %v5066_v20 = vld [vmem:[%s6192_s12 + $0x250] ss:$8 sps:$4 sm:$0xff]  }
  0xd7   : > { %3152 = vmatpush1.bf16.msra.mxu0 %v4998_v28  ;;  %v5071_v19 = vld [vmem:[%s6192_s12 + $0x354] ss:$8 sps:$4 sm:$0xff]   ;;  %v5069_v21 = vld [vmem:[%s6192_s12 + $0x350] ss:$8 sps:$4 sm:$0xff]   ;;  %v5074_v22 = vld [vmem:[%s6192_s12 + $0x244] ss:$8 sps:$4 sm:$0xff]  }
  0xd8   : > { %3193 = vmatpush1.bf16.msra.mxu1 %v4999_v29  ;;  %3153 = vmatprep.subr.bf16.mxu0 %v5000_v30  ;;  %v5077_v23 = vld [vmem:[%s6192_s12 + $0x344] ss:$8 sps:$4 sm:$0xff]   ;;  %v5072_v24 = vld [vmem:[%s6192_s12 + $0x240] ss:$8 sps:$4 sm:$0xff]   ;;  %v5080_v26 = vld [vmem:[%s6192_s12 + $0x234] ss:$8 sps:$4 sm:$0xff]  }
  0xd9   : > { %3194 = vmatprep.subr.bf16.mxu1 %v5002_v31  ;;  %v5075_v25 = vld [vmem:[%s6192_s12 + $0x340] ss:$8 sps:$4 sm:$0xff]   ;;  %v5083_v27 = vld [vmem:[%s6192_s12 + $0x334] ss:$8 sps:$4 sm:$0xff]   ;;  %v5078_v28 = vld [vmem:[%s6192_s12 + $0x230] ss:$8 sps:$4 sm:$0xff]  }
  0xda   : > { %v5081_v29 = vld [vmem:[%s6192_s12 + $0x330] ss:$8 sps:$4 sm:$0xff]   ;;  %v5086_v30 = vld [vmem:[%s6192_s12 + $0x224] ss:$8 sps:$4 sm:$0xff]   ;;  %v5108_v52 = vld [vmem:[%s6192_s12 + $0x2e0] ss:$8 sps:$4 sm:$0xff]  }
  0xdb   : > { %3154 = vmatpush1.bf16.msra.mxu0 %v5004_v32  ;;  %v5089_v31 = vld [vmem:[%s6192_s12 + $0x324] ss:$8 sps:$4 sm:$0xff]   ;;  %v5084_v32 = vld [vmem:[%s6192_s12 + $0x220] ss:$8 sps:$4 sm:$0xff]   ;;  %v5102_v48 = vld [vmem:[%s6192_s12 + $0x2f0] ss:$8 sps:$4 sm:$0xff]  }
  0xdc   : > { %3195 = vmatpush1.bf16.msra.mxu1 %v5005_v33  ;;  %3155 = vmatprep.subr.bf16.mxu0 %v5006_v34  ;;  %v5087_v33 = vld [vmem:[%s6192_s12 + $0x320] ss:$8 sps:$4 sm:$0xff]   ;;  %v5092_v34 = vld [vmem:[%s6192_s12 + $0x214] ss:$8 sps:$4 sm:$0xff]   ;;  %v5113_v51 = vld [vmem:[%s6192_s12 + $0x3e4] ss:$8 sps:$4 sm:$0xff]  }
  0xdd   : > { %3196 = vmatprep.subr.bf16.mxu1 %v5008_v35  ;;  %v5095_v35 = vld [vmem:[%s6192_s12 + $0x314] ss:$8 sps:$4 sm:$0xff]   ;;  %p3717_p6 = scmp.eq.s32.totalorder %s6845_s16, 3  ;;  %p4738_p7 = scmp.ne.s32.totalorder %s6845_s16, 3 }
  0xde   : > { %v5116_v54 = vld [vmem:[%s6192_s12 + $0x2d4] ss:$8 sps:$4 sm:$0xff]  }
  0xdf   : > { %3156 = vmatpush2.bf16.msra.mxu0 %v5010_v36  ;;  %v498_v36 = vld [vmem:[%s6223_s17 + $0x28] sm:$0xff]  ;;  %v5140_v6 = vld [vmem:[%s6192_s12 + $0x294] ss:$8 sps:$4 sm:$0xff]  }
  0xe0   : > { %3197 = vmatpush2.bf16.msra.mxu1 %v5011_v37  ;;  %3157 = vmatprep.subr.bf16.mxu0 %v5012_v38  ;;  %v5090_v37 = vld [vmem:[%s6192_s12 + $0x210] ss:$8 sps:$4 sm:$0xff]   ;;  %v525_v38 = vpack.c.bf16 %v498_v36, %v498_v36  ;;  %v5143_v7 = vld [vmem:[%s6192_s12 + $0x394] ss:$8 sps:$4 sm:$0xff]   ;;  %v5168_v36 = vld [vmem:[%s6192_s12 + $0x440] ss:$8 sps:$4 sm:$0xff]  }
  0xe1   : > { %3198 = vmatprep.subr.bf16.mxu1 %v5014_v39  ;;  %v5093_v39 = vld [vmem:[%s6192_s12 + $0x310] ss:$8 sps:$4 sm:$0xff]  }
  0xe3   : > { %3158 = vmatpush2.bf16.msra.mxu0 %v5016_v40  ;;  %v5098_v40 = vld [vmem:[%s6192_s12 + $0x204] ss:$8 sps:$4 sm:$0xff]  }
  0xe4   : > { %3199 = vmatpush2.bf16.msra.mxu1 %v5017_v41  ;;  %3159 = vmatprep.subr.bf16.mxu0 %v5018_v42  ;;  %v500_v41 = vld [vmem:[%s6223_s17 + $0x38] sm:$0xff]  ;;  %v5101_v42 = vld [vmem:[%s6192_s12 + $0x304] ss:$8 sps:$4 sm:$0xff]  }
  0xe5   : > { %3200 = vmatprep.subr.bf16.mxu1 %v5020_v43  ;;  %v527_v43 = vpack.c.bf16 %v500_v41, %v500_v41  ;;  %v5177_v41 = vld [vmem:[%s6192_s12 + $0x530] ss:$8 sps:$4 sm:$0xff]  }
  0xe7   : > { %3160 = vmatpush2.bf16.msra.mxu0 %v5022_v44  ;;  %v5096_v44 = vld [vmem:[%s6192_s12 + $0x200] ss:$8 sps:$4 sm:$0xff]  }
  0xe8   : > { %3201 = vmatpush2.bf16.msra.mxu1 %v5023_v45  ;;  %3161 = vmatprep.subr.bf16.mxu0 %v5024_v46  ;;  %v5099_v45 = vld [vmem:[%s6192_s12 + $0x300] ss:$8 sps:$4 sm:$0xff]   ;;  %v5104_v46 = vld [vmem:[%s6192_s12 + $0x2f4] ss:$8 sps:$4 sm:$0xff]  }
  0xe9   : > { %3202 = vmatprep.subr.bf16.mxu1 %v5026_v47  ;;  %v5107_v47 = vld [vmem:[%s6192_s12 + $0x3f4] ss:$8 sps:$4 sm:$0xff]  }
  0xeb   : > { %3162 = vmatpush2.bf16.msra.mxu0 %v5028_v49  ;;  %v5105_v49 = vld [vmem:[%s6192_s12 + $0x3f0] ss:$8 sps:$4 sm:$0xff]  }
  0xec   : > { %3203 = vmatpush2.bf16.msra.mxu1 %v5029_v50  ;;  %3163 = vmatprep.subr.bf16.mxu0 %v5030_v53  ;;  %v5110_v50 = vld [vmem:[%s6192_s12 + $0x2e4] ss:$8 sps:$4 sm:$0xff]   ;;  %v5111_v53 = vld [vmem:[%s6192_s12 + $0x3e0] ss:$8 sps:$4 sm:$0xff]  }
  0xed   : > { %3204 = vmatprep.subr.bf16.mxu1 %v5032_v55  ;;  %v5119_v55 = vld [vmem:[%s6192_s12 + $0x3d4] ss:$8 sps:$4 sm:$0xff]  }
  0xef   : > { %3164 = vmatpush2.bf16.msra.mxu0 %v5034_v56  ;;  %v5114_v56 = vld [vmem:[%s6192_s12 + $0x2d0] ss:$8 sps:$4 sm:$0xff]  }
  0xf0   : > { %3205 = vmatpush2.bf16.msra.mxu1 %v5035_v57  ;;  %3165 = vmatprep.subr.bf16.mxu0 %v5036_v58  ;;  %v5117_v57 = vld [vmem:[%s6192_s12 + $0x3d0] ss:$8 sps:$4 sm:$0xff]   ;;  %v5122_v58 = vld [vmem:[%s6192_s12 + $0x2c4] ss:$8 sps:$4 sm:$0xff]  }
  0xf1   : > { %3206 = vmatprep.subr.bf16.mxu1 %v5038_v59  ;;  %v5125_v59 = vld [vmem:[%s6192_s12 + $0x3c4] ss:$8 sps:$4 sm:$0xff]  }
  0xf3   : > { %3166 = vmatpush2.bf16.msra.mxu0 %v5040_v60  ;;  %v5120_v60 = vld [vmem:[%s6192_s12 + $0x2c0] ss:$8 sps:$4 sm:$0xff]  }
  0xf4   : > { %3207 = vmatpush2.bf16.msra.mxu1 %v5041_v61  ;;  %3167 = vmatprep.subr.bf16.mxu0 %v5042_v62  ;;  %v5123_v61 = vld [vmem:[%s6192_s12 + $0x3c0] ss:$8 sps:$4 sm:$0xff]   ;;  %v5128_v62 = vld [vmem:[%s6192_s12 + $0x2b4] ss:$8 sps:$4 sm:$0xff]  }
  0xf5   : > { %3208 = vmatprep.subr.bf16.mxu1 %v5044_v63  ;;  %v5131_v63 = vld [vmem:[%s6192_s12 + $0x3b4] ss:$8 sps:$4 sm:$0xff]  }
  0xf7   : > { %3168 = vmatpush2.bf16.msra.mxu0 %v5046_v0  ;;  %v5126_v0 = vld [vmem:[%s6192_s12 + $0x2b0] ss:$8 sps:$4 sm:$0xff]  }
  0xf8   : > { %3209 = vmatpush2.bf16.msra.mxu1 %v5047_v1  ;;  %3169 = vmatprep.subr.bf16.mxu0 %v5048_v2  ;;  %v5129_v1 = vld [vmem:[%s6192_s12 + $0x3b0] ss:$8 sps:$4 sm:$0xff]   ;;  %v5134_v2 = vld [vmem:[%s6192_s12 + $0x2a4] ss:$8 sps:$4 sm:$0xff]  }
  0xf9   : > { %3210 = vmatprep.subr.bf16.mxu1 %v5050_v3  ;;  %v5137_v3 = vld [vmem:[%s6192_s12 + $0x3a4] ss:$8 sps:$4 sm:$0xff]  }
  0xfb   : > { %3170 = vmatpush2.bf16.msra.mxu0 %v5052_v4  ;;  %v5132_v4 = vld [vmem:[%s6192_s12 + $0x2a0] ss:$8 sps:$4 sm:$0xff]  }
  0xfc   : > { %3211 = vmatpush2.bf16.msra.mxu1 %v5053_v5  ;;  %3221 = vmatprep.subr.bf16.mxu0 %v5056_v8  ;;  %v5135_v5 = vld [vmem:[%s6192_s12 + $0x3a0] ss:$8 sps:$4 sm:$0xff]   ;;  %v5138_v8 = vld [vmem:[%s6192_s12 + $0x290] ss:$8 sps:$4 sm:$0xff]  }
  0xfd   : > { %3262 = vmatprep.subr.bf16.mxu1 %v5059_v9  ;;  %v5141_v9 = vld [vmem:[%s6192_s12 + $0x390] ss:$8 sps:$4 sm:$0xff]  }
  0xfe   : > { %3172 = vmatmul.mubr.bf16.vlgmr.msra.gmra.mxu0 %v520_v10  ;;  %v5146_v10 = vld [vmem:[%s6192_s12 + $0x284] ss:$8 sps:$4 sm:$0xff]  }
  0xff   : > { %3213 = vmatmul.mubr.bf16.vlgmr.msra.gmra.mxu1 %v522_v11  ;;  %3222 = vmatpush1.bf16.msra.mxu0 %v5054_v12  ;;  %v5149_v11 = vld [vmem:[%s6192_s12 + $0x384] ss:$8 sps:$4 sm:$0xff]   ;;  %v5144_v12 = vld [vmem:[%s6192_s12 + $0x280] ss:$8 sps:$4 sm:$0xff]  }
 0x100   : > { %3263 = vmatpush1.bf16.msra.mxu1 %v5057_v13  ;;  %3223 = vmatprep.subr.bf16.mxu0 %v5062_v14  ;;  %v5147_v13 = vld [vmem:[%s6192_s12 + $0x380] ss:$8 sps:$4 sm:$0xff]  }
 0x101   : > { %3264 = vmatprep.subr.bf16.mxu1 %v5065_v15  ;;  %3253 = vmatprep.mubr.bf16.mxu0 %v525_v38  ;;  %v497_v14 = vld [vmem:[%s6223_s17 + $0x20] sm:$0xff]  ;;  %v5152_v15 = vld [vmem:[%s6192_s12 + $0x474] ss:$8 sps:$4 sm:$0xff]  }
 0x102   : > { %3294 = vmatprep.mubr.bf16.mxu1 %v527_v43  ;;  %v5176_v38 = vld [vmem:[%s6192_s12 + $0x434] ss:$8 sps:$4 sm:$0xff]   ;;  %v5185_v43 = vld [vmem:[%s6192_s12 + $0x524] ss:$8 sps:$4 sm:$0xff]  }
 0x103   : > { %3224 = vmatpush1.bf16.msra.mxu0 %v5060_v16  ;;  %v499_v16 = vld [vmem:[%s6223_s17 + $0x30] sm:$0xff] }
 0x104   : > { %3265 = vmatpush1.bf16.msra.mxu1 %v5063_v17  ;;  %3225 = vmatprep.subr.bf16.mxu0 %v5068_v18  ;;  %v5155_v17 = vld [vmem:[%s6192_s12 + $0x574] ss:$8 sps:$4 sm:$0xff]   ;;  %v524_v18 = vpack.c.bf16 %v497_v14, %v497_v14 }
 0x105   : > { %3266 = vmatprep.subr.bf16.mxu1 %v5071_v19  ;;  %v5150_v19 = vld [vmem:[%s6192_s12 + $0x470] ss:$8 sps:$4 sm:$0xff]   ;;  %v5236_v14 = vld [vmem:[%s6192_s12 + $0x494] ss:$8 sps:$4 sm:$0xff]  }
 0x107   : > { %3226 = vmatpush1.bf16.msra.mxu0 %v5066_v20  ;;  %v526_v20 = vpack.c.bf16 %v499_v16, %v499_v16  ;;  %v5234_v16 = vld [vmem:[%s6192_s12 + $0x490] ss:$8 sps:$4 sm:$0xff]  }
 0x108   : > { %3267 = vmatpush1.bf16.msra.mxu1 %v5069_v21  ;;  %3227 = vmatprep.subr.bf16.mxu0 %v5074_v22  ;;  %v5153_v21 = vld [vmem:[%s6192_s12 + $0x570] ss:$8 sps:$4 sm:$0xff]   ;;  %v5158_v22 = vld [vmem:[%s6192_s12 + $0x464] ss:$8 sps:$4 sm:$0xff]  }
 0x109   : > { %3268 = vmatprep.subr.bf16.mxu1 %v5077_v23  ;;  %v5161_v23 = vld [vmem:[%s6192_s12 + $0x564] ss:$8 sps:$4 sm:$0xff]  }
 0x10b   : > { %3228 = vmatpush1.bf16.msra.mxu0 %v5072_v24  ;;  %v502_v24 = vld [vmem:[%s6223_s17 + $0x48] sm:$0xff] }
 0x10c   : > { %3269 = vmatpush1.bf16.msra.mxu1 %v5075_v25  ;;  %3229 = vmatprep.subr.bf16.mxu0 %v5080_v26  ;;  %v5156_v25 = vld [vmem:[%s6192_s12 + $0x460] ss:$8 sps:$4 sm:$0xff]   ;;  %v529_v26 = vpack.c.bf16 %v502_v24, %v502_v24  ;;  %v503_v24 = vld [vmem:[%s6223_s17 + $0x50] sm:$0xff] }
 0x10d   : > { %3270 = vmatprep.subr.bf16.mxu1 %v5083_v27  ;;  %v5159_v27 = vld [vmem:[%s6192_s12 + $0x560] ss:$8 sps:$4 sm:$0xff]  }
 0x10f   : > { %3230 = vmatpush1.bf16.msra.mxu0 %v5078_v28  ;;  %v5164_v28 = vld [vmem:[%s6192_s12 + $0x454] ss:$8 sps:$4 sm:$0xff]  }
 0x110   : > { %3271 = vmatpush1.bf16.msra.mxu1 %v5081_v29  ;;  %3231 = vmatprep.subr.bf16.mxu0 %v5086_v30  ;;  %v504_v29 = vld [vmem:[%s6223_s17 + $0x58] sm:$0xff] }
 0x111   : > { %3272 = vmatprep.subr.bf16.mxu1 %v5089_v31  ;;  %v5167_v30 = vld [vmem:[%s6192_s12 + $0x554] ss:$8 sps:$4 sm:$0xff]   ;;  %v531_v31 = vpack.c.bf16 %v504_v29, %v504_v29  ;;  %v530_v29 = vpack.c.bf16 %v503_v24, %v503_v24  ;;  %v5330_v24 = vld [vmem:[%s6192_s12 + $0x690] ss:$8 sps:$4 sm:$0xff]  }
 0x113   : > { %3232 = vmatpush1.bf16.msra.mxu0 %v5084_v32  ;;  %v5162_v32 = vld [vmem:[%s6192_s12 + $0x450] ss:$8 sps:$4 sm:$0xff]  }
 0x114   : > { %3273 = vmatpush1.bf16.msra.mxu1 %v5087_v33  ;;  %3233 = vmatprep.subr.bf16.mxu0 %v5092_v34  ;;  %v5165_v33 = vld [vmem:[%s6192_s12 + $0x550] ss:$8 sps:$4 sm:$0xff]   ;;  %v5170_v34 = vld [vmem:[%s6192_s12 + $0x444] ss:$8 sps:$4 sm:$0xff]  }
 0x115   : > { %3274 = vmatprep.subr.bf16.mxu1 %v5095_v35  ;;  %v5173_v35 = vld [vmem:[%s6192_s12 + $0x544] ss:$8 sps:$4 sm:$0xff]  }
 0x117   : > { %3234 = vmatpush1.bf16.msra.mxu0 %v5090_v37  ;;  %v5171_v37 = vld [vmem:[%s6192_s12 + $0x540] ss:$8 sps:$4 sm:$0xff]  }
 0x118   : > { %3275 = vmatpush1.bf16.msra.mxu1 %v5093_v39  ;;  %3235 = vmatprep.subr.bf16.mxu0 %v5098_v40  ;;  %v5179_v39 = vld [vmem:[%s6192_s12 + $0x534] ss:$8 sps:$4 sm:$0xff]   ;;  %v5174_v40 = vld [vmem:[%s6192_s12 + $0x430] ss:$8 sps:$4 sm:$0xff]  }
 0x119   : > { %3276 = vmatprep.subr.bf16.mxu1 %v5101_v42  ;;  %v5182_v42 = vld [vmem:[%s6192_s12 + $0x424] ss:$8 sps:$4 sm:$0xff]  }
 0x11b   : > { %3236 = vmatpush1.bf16.msra.mxu0 %v5096_v44  ;;  %v5180_v44 = vld [vmem:[%s6192_s12 + $0x420] ss:$8 sps:$4 sm:$0xff]  }
 0x11c   : > { %3277 = vmatpush1.bf16.msra.mxu1 %v5099_v45  ;;  %3237 = vmatprep.subr.bf16.mxu0 %v5104_v46  ;;  %v5183_v45 = vld [vmem:[%s6192_s12 + $0x520] ss:$8 sps:$4 sm:$0xff]   ;;  %v5188_v46 = vld [vmem:[%s6192_s12 + $0x414] ss:$8 sps:$4 sm:$0xff]  }
 0x11d   : > { %3278 = vmatprep.subr.bf16.mxu1 %v5107_v47  ;;  %v5191_v47 = vld [vmem:[%s6192_s12 + $0x514] ss:$8 sps:$4 sm:$0xff]  }
 0x11f   : > { %3238 = vmatpush2.bf16.msra.mxu0 %v5102_v48  ;;  %v5186_v48 = vld [vmem:[%s6192_s12 + $0x410] ss:$8 sps:$4 sm:$0xff]  }
 0x120   : > { %3279 = vmatpush2.bf16.msra.mxu1 %v5105_v49  ;;  %3239 = vmatprep.subr.bf16.mxu0 %v5110_v50  ;;  %v5189_v49 = vld [vmem:[%s6192_s12 + $0x510] ss:$8 sps:$4 sm:$0xff]   ;;  %v5194_v50 = vld [vmem:[%s6192_s12 + $0x404] ss:$8 sps:$4 sm:$0xff]  }
 0x121   : > { %3280 = vmatprep.subr.bf16.mxu1 %v5113_v51  ;;  %v5197_v51 = vld [vmem:[%s6192_s12 + $0x504] ss:$8 sps:$4 sm:$0xff]  }
 0x123   : > { %3240 = vmatpush2.bf16.msra.mxu0 %v5108_v52  ;;  %v5192_v52 = vld [vmem:[%s6192_s12 + $0x400] ss:$8 sps:$4 sm:$0xff]  }
 0x124   : > { %3281 = vmatpush2.bf16.msra.mxu1 %v5111_v53  ;;  %3241 = vmatprep.subr.bf16.mxu0 %v5116_v54  ;;  %v5195_v53 = vld [vmem:[%s6192_s12 + $0x500] ss:$8 sps:$4 sm:$0xff]   ;;  %v5200_v54 = vld [vmem:[%s6192_s12 + $0x4f4] ss:$8 sps:$4 sm:$0xff]  }
 0x125   : > { %3282 = vmatprep.subr.bf16.mxu1 %v5119_v55  ;;  %v5203_v55 = vld [vmem:[%s6192_s12 + $0x5f4] ss:$8 sps:$4 sm:$0xff]  }
 0x127   : > { %3242 = vmatpush2.bf16.msra.mxu0 %v5114_v56  ;;  %v5198_v56 = vld [vmem:[%s6192_s12 + $0x4f0] ss:$8 sps:$4 sm:$0xff]  }
 0x128   : > { %3283 = vmatpush2.bf16.msra.mxu1 %v5117_v57  ;;  %3243 = vmatprep.subr.bf16.mxu0 %v5122_v58  ;;  %v5201_v57 = vld [vmem:[%s6192_s12 + $0x5f0] ss:$8 sps:$4 sm:$0xff]   ;;  %v5206_v58 = vld [vmem:[%s6192_s12 + $0x4e4] ss:$8 sps:$4 sm:$0xff]  }
 0x129   : > { %3284 = vmatprep.subr.bf16.mxu1 %v5125_v59  ;;  %v5209_v59 = vld [vmem:[%s6192_s12 + $0x5e4] ss:$8 sps:$4 sm:$0xff]  }
 0x12b   : > { %3244 = vmatpush2.bf16.msra.mxu0 %v5120_v60  ;;  %v5204_v60 = vld [vmem:[%s6192_s12 + $0x4e0] ss:$8 sps:$4 sm:$0xff]  }
 0x12c   : > { %3285 = vmatpush2.bf16.msra.mxu1 %v5123_v61  ;;  %3245 = vmatprep.subr.bf16.mxu0 %v5128_v62  ;;  %v5207_v61 = vld [vmem:[%s6192_s12 + $0x5e0] ss:$8 sps:$4 sm:$0xff]   ;;  %v5212_v62 = vld [vmem:[%s6192_s12 + $0x4d4] ss:$8 sps:$4 sm:$0xff]  }
 0x12d   : > { %3286 = vmatprep.subr.bf16.mxu1 %v5131_v63  ;;  %v5215_v63 = vld [vmem:[%s6192_s12 + $0x5d4] ss:$8 sps:$4 sm:$0xff]  }
 0x12f   : > { %3246 = vmatpush2.bf16.msra.mxu0 %v5126_v0  ;;  %v5210_v0 = vld [vmem:[%s6192_s12 + $0x4d0] ss:$8 sps:$4 sm:$0xff]  }
 0x130   : > { %3287 = vmatpush2.bf16.msra.mxu1 %v5129_v1  ;;  %3247 = vmatprep.subr.bf16.mxu0 %v5134_v2  ;;  %v5213_v1 = vld [vmem:[%s6192_s12 + $0x5d0] ss:$8 sps:$4 sm:$0xff]   ;;  %v5218_v2 = vld [vmem:[%s6192_s12 + $0x4c4] ss:$8 sps:$4 sm:$0xff]  }
 0x131   : > { %3288 = vmatprep.subr.bf16.mxu1 %v5137_v3  ;;  %v5221_v3 = vld [vmem:[%s6192_s12 + $0x5c4] ss:$8 sps:$4 sm:$0xff]  }
 0x133   : > { %3248 = vmatpush2.bf16.msra.mxu0 %v5132_v4  ;;  %v5216_v4 = vld [vmem:[%s6192_s12 + $0x4c0] ss:$8 sps:$4 sm:$0xff]  }
 0x134   : > { %3289 = vmatpush2.bf16.msra.mxu1 %v5135_v5  ;;  %3249 = vmatprep.subr.bf16.mxu0 %v5140_v6  ;;  %v5219_v5 = vld [vmem:[%s6192_s12 + $0x5c0] ss:$8 sps:$4 sm:$0xff]   ;;  %v5224_v6 = vld [vmem:[%s6192_s12 + $0x4b4] ss:$8 sps:$4 sm:$0xff]  }
 0x135   : > { %3290 = vmatprep.subr.bf16.mxu1 %v5143_v7  ;;  %v5227_v7 = vld [vmem:[%s6192_s12 + $0x5b4] ss:$8 sps:$4 sm:$0xff]  }
 0x137   : > { %3250 = vmatpush2.bf16.msra.mxu0 %v5138_v8  ;;  %v5222_v8 = vld [vmem:[%s6192_s12 + $0x4b0] ss:$8 sps:$4 sm:$0xff]  }
 0x138   : > { %3291 = vmatpush2.bf16.msra.mxu1 %v5141_v9  ;;  %3251 = vmatprep.subr.bf16.mxu0 %v5146_v10  ;;  %v5225_v9 = vld [vmem:[%s6192_s12 + $0x5b0] ss:$8 sps:$4 sm:$0xff]   ;;  %v5230_v10 = vld [vmem:[%s6192_s12 + $0x4a4] ss:$8 sps:$4 sm:$0xff]  }
 0x139   : > { %3292 = vmatprep.subr.bf16.mxu1 %v5149_v11  ;;  %v5233_v11 = vld [vmem:[%s6192_s12 + $0x5a4] ss:$8 sps:$4 sm:$0xff]  }
 0x13b   : > { %3252 = vmatpush2.bf16.msra.mxu0 %v5144_v12  ;;  %v5228_v12 = vld [vmem:[%s6192_s12 + $0x4a0] ss:$8 sps:$4 sm:$0xff]  }
 0x13c   : > { %3293 = vmatpush2.bf16.msra.mxu1 %v5147_v13  ;;  %3303 = vmatprep.subr.bf16.mxu0 %v5152_v15  ;;  %v5231_v13 = vld [vmem:[%s6192_s12 + $0x5a0] ss:$8 sps:$4 sm:$0xff]   ;;  %v5239_v15 = vld [vmem:[%s6192_s12 + $0x594] ss:$8 sps:$4 sm:$0xff]  }
 0x13d   : > { %3344 = vmatprep.subr.bf16.mxu1 %v5155_v17  ;;  %v5237_v17 = vld [vmem:[%s6192_s12 + $0x590] ss:$8 sps:$4 sm:$0xff]  }
 0x13e   : > { %3254 = vmatmul.mubr.bf16.vlgmr.msra.gmra.mxu0 %v524_v18  ;;  %v5242_v18 = vld [vmem:[%s6192_s12 + $0x484] ss:$8 sps:$4 sm:$0xff]  }
 0x13f   : > { %3295 = vmatmul.mubr.bf16.vlgmr.msra.gmra.mxu1 %v526_v20  ;;  %3304 = vmatpush1.bf16.msra.mxu0 %v5150_v19  ;;  %v5245_v19 = vld [vmem:[%s6192_s12 + $0x584] ss:$8 sps:$4 sm:$0xff]   ;;  %v5240_v20 = vld [vmem:[%s6192_s12 + $0x480] ss:$8 sps:$4 sm:$0xff]  }
 0x140   : > { %3345 = vmatpush1.bf16.msra.mxu1 %v5153_v21  ;;  %3305 = vmatprep.subr.bf16.mxu0 %v5158_v22  ;;  %v5243_v21 = vld [vmem:[%s6192_s12 + $0x580] ss:$8 sps:$4 sm:$0xff]  }
 0x141   : > { %3346 = vmatprep.subr.bf16.mxu1 %v5161_v23  ;;  %3335 = vmatprep.mubr.bf16.mxu0 %v529_v26  ;;  %v501_v22 = vld [vmem:[%s6223_s17 + $0x40] sm:$0xff]  ;;  %v5248_v23 = vld [vmem:[%s6192_s12 + $0x674] ss:$8 sps:$4 sm:$0xff]   ;;  %v5246_v26 = vld [vmem:[%s6192_s12 + $0x670] ss:$8 sps:$4 sm:$0xff]  }
 0x142   : > { %3376 = vmatprep.mubr.bf16.mxu1 %v531_v31  ;;  %v508_v31 = vld [vmem:[%s6223_s17 + $0x78] sm:$0xff] }
 0x143   : > { %3306 = vmatpush1.bf16.msra.mxu0 %v5156_v25  ;;  %v5251_v25 = vld [vmem:[%s6192_s12 + $0x774] ss:$8 sps:$4 sm:$0xff]  }
 0x144   : > { %3347 = vmatpush1.bf16.msra.mxu1 %v5159_v27  ;;  %3307 = vmatprep.subr.bf16.mxu0 %v5164_v28  ;;  %v5249_v27 = vld [vmem:[%s6192_s12 + $0x770] ss:$8 sps:$4 sm:$0xff]   ;;  %v528_v28 = vpack.c.bf16 %v501_v22, %v501_v22  ;;  %v5332_v22 = vld [vmem:[%s6192_s12 + $0x694] ss:$8 sps:$4 sm:$0xff]  }
 0x145   : > { %3348 = vmatprep.subr.bf16.mxu1 %v5167_v30  ;;  %v506_v30 = vld [vmem:[%s6223_s17 + $0x68] sm:$0xff] }
 0x147   : > { %3308 = vmatpush1.bf16.msra.mxu0 %v5162_v32  ;;  %v5254_v32 = vld [vmem:[%s6192_s12 + $0x664] ss:$8 sps:$4 sm:$0xff]  }
 0x148   : > { %3349 = vmatpush1.bf16.msra.mxu1 %v5165_v33  ;;  %3309 = vmatprep.subr.bf16.mxu0 %v5170_v34  ;;  %v5257_v33 = vld [vmem:[%s6192_s12 + $0x764] ss:$8 sps:$4 sm:$0xff]   ;;  %v533_v34 = vpack.c.bf16 %v506_v30, %v506_v30 }
 0x149   : > { %3350 = vmatprep.subr.bf16.mxu1 %v5173_v35  ;;  %v535_v35 = vpack.c.bf16 %v508_v31, %v508_v31  ;;  %v505_v30 = vld [vmem:[%s6223_s17 + $0x60] sm:$0xff]  ;;  %v5344_v31 = vld [vmem:[%s6192_s12 + $0x874] ss:$8 sps:$4 sm:$0xff]  }
 0x14b   : > { %3310 = vmatpush1.bf16.msra.mxu0 %v5168_v36  ;;  %v5252_v36 = vld [vmem:[%s6192_s12 + $0x660] ss:$8 sps:$4 sm:$0xff]  }
 0x14c   : > { %3351 = vmatpush1.bf16.msra.mxu1 %v5171_v37  ;;  %3311 = vmatprep.subr.bf16.mxu0 %v5176_v38  ;;  %v5255_v37 = vld [vmem:[%s6192_s12 + $0x760] ss:$8 sps:$4 sm:$0xff]   ;;  %v5260_v38 = vld [vmem:[%s6192_s12 + $0x654] ss:$8 sps:$4 sm:$0xff]  }
 0x14d   : > { %3352 = vmatprep.subr.bf16.mxu1 %v5179_v39  ;;  %v5263_v39 = vld [vmem:[%s6192_s12 + $0x754] ss:$8 sps:$4 sm:$0xff]  }
 0x14f   : > { %3312 = vmatpush1.bf16.msra.mxu0 %v5174_v40  ;;  %v5258_v40 = vld [vmem:[%s6192_s12 + $0x650] ss:$8 sps:$4 sm:$0xff]  }
 0x150   : > { %3353 = vmatpush1.bf16.msra.mxu1 %v5177_v41  ;;  %3313 = vmatprep.subr.bf16.mxu0 %v5182_v42  ;;  %v5261_v41 = vld [vmem:[%s6192_s12 + $0x750] ss:$8 sps:$4 sm:$0xff]   ;;  %v5266_v42 = vld [vmem:[%s6192_s12 + $0x644] ss:$8 sps:$4 sm:$0xff]  }
 0x151   : > { %3354 = vmatprep.subr.bf16.mxu1 %v5185_v43  ;;  %v5269_v43 = vld [vmem:[%s6192_s12 + $0x744] ss:$8 sps:$4 sm:$0xff]  }
 0x153   : > { %3314 = vmatpush1.bf16.msra.mxu0 %v5180_v44  ;;  %v5264_v44 = vld [vmem:[%s6192_s12 + $0x640] ss:$8 sps:$4 sm:$0xff]  }
 0x154   : > { %3355 = vmatpush1.bf16.msra.mxu1 %v5183_v45  ;;  %3315 = vmatprep.subr.bf16.mxu0 %v5188_v46  ;;  %v5267_v45 = vld [vmem:[%s6192_s12 + $0x740] ss:$8 sps:$4 sm:$0xff]   ;;  %v5272_v46 = vld [vmem:[%s6192_s12 + $0x634] ss:$8 sps:$4 sm:$0xff]  }
 0x155   : > { %3356 = vmatprep.subr.bf16.mxu1 %v5191_v47  ;;  %v5275_v47 = vld [vmem:[%s6192_s12 + $0x734] ss:$8 sps:$4 sm:$0xff]  }
 0x157   : > { %3316 = vmatpush1.bf16.msra.mxu0 %v5186_v48  ;;  %v5270_v48 = vld [vmem:[%s6192_s12 + $0x630] ss:$8 sps:$4 sm:$0xff]  }
 0x158   : > { %3357 = vmatpush1.bf16.msra.mxu1 %v5189_v49  ;;  %3317 = vmatprep.subr.bf16.mxu0 %v5194_v50  ;;  %v5273_v49 = vld [vmem:[%s6192_s12 + $0x730] ss:$8 sps:$4 sm:$0xff]   ;;  %v5278_v50 = vld [vmem:[%s6192_s12 + $0x624] ss:$8 sps:$4 sm:$0xff]  }
 0x159   : > { %3358 = vmatprep.subr.bf16.mxu1 %v5197_v51  ;;  %v5281_v51 = vld [vmem:[%s6192_s12 + $0x724] ss:$8 sps:$4 sm:$0xff]  }
 0x15b   : > { %3318 = vmatpush1.bf16.msra.mxu0 %v5192_v52  ;;  %v5276_v52 = vld [vmem:[%s6192_s12 + $0x620] ss:$8 sps:$4 sm:$0xff]  }
 0x15c   : > { %3359 = vmatpush1.bf16.msra.mxu1 %v5195_v53  ;;  %3319 = vmatprep.subr.bf16.mxu0 %v5200_v54  ;;  %v5279_v53 = vld [vmem:[%s6192_s12 + $0x720] ss:$8 sps:$4 sm:$0xff]   ;;  %v5284_v54 = vld [vmem:[%s6192_s12 + $0x614] ss:$8 sps:$4 sm:$0xff]  }
 0x15d   : > { %3360 = vmatprep.subr.bf16.mxu1 %v5203_v55  ;;  %v5287_v55 = vld [vmem:[%s6192_s12 + $0x714] ss:$8 sps:$4 sm:$0xff]  }
 0x15f   : > { %3320 = vmatpush2.bf16.msra.mxu0 %v5198_v56  ;;  %v5282_v56 = vld [vmem:[%s6192_s12 + $0x610] ss:$8 sps:$4 sm:$0xff]  }
 0x160   : > { %3361 = vmatpush2.bf16.msra.mxu1 %v5201_v57  ;;  %3321 = vmatprep.subr.bf16.mxu0 %v5206_v58  ;;  %v5285_v57 = vld [vmem:[%s6192_s12 + $0x710] ss:$8 sps:$4 sm:$0xff]   ;;  %v5290_v58 = vld [vmem:[%s6192_s12 + $0x604] ss:$8 sps:$4 sm:$0xff]  }
 0x161   : > { %3362 = vmatprep.subr.bf16.mxu1 %v5209_v59  ;;  %v5293_v59 = vld [vmem:[%s6192_s12 + $0x704] ss:$8 sps:$4 sm:$0xff]  }
 0x163   : > { %3322 = vmatpush2.bf16.msra.mxu0 %v5204_v60  ;;  %v5288_v60 = vld [vmem:[%s6192_s12 + $0x600] ss:$8 sps:$4 sm:$0xff]  }
 0x164   : > { %3363 = vmatpush2.bf16.msra.mxu1 %v5207_v61  ;;  %3323 = vmatprep.subr.bf16.mxu0 %v5212_v62  ;;  %v5291_v61 = vld [vmem:[%s6192_s12 + $0x700] ss:$8 sps:$4 sm:$0xff]   ;;  %v5296_v62 = vld [vmem:[%s6192_s12 + $0x6f4] ss:$8 sps:$4 sm:$0xff]  }
 0x165   : > { %3364 = vmatprep.subr.bf16.mxu1 %v5215_v63  ;;  %v5299_v63 = vld [vmem:[%s6192_s12 + $0x7f4] ss:$8 sps:$4 sm:$0xff]  }
 0x167   : > { %3324 = vmatpush2.bf16.msra.mxu0 %v5210_v0  ;;  %v5294_v0 = vld [vmem:[%s6192_s12 + $0x6f0] ss:$8 sps:$4 sm:$0xff]  }
 0x168   : > { %3365 = vmatpush2.bf16.msra.mxu1 %v5213_v1  ;;  %3325 = vmatprep.subr.bf16.mxu0 %v5218_v2  ;;  %v5297_v1 = vld [vmem:[%s6192_s12 + $0x7f0] ss:$8 sps:$4 sm:$0xff]   ;;  %v5302_v2 = vld [vmem:[%s6192_s12 + $0x6e4] ss:$8 sps:$4 sm:$0xff]  }
 0x169   : > { %3366 = vmatprep.subr.bf16.mxu1 %v5221_v3  ;;  %v5305_v3 = vld [vmem:[%s6192_s12 + $0x7e4] ss:$8 sps:$4 sm:$0xff]  }
 0x16b   : > { %3326 = vmatpush2.bf16.msra.mxu0 %v5216_v4  ;;  %v5300_v4 = vld [vmem:[%s6192_s12 + $0x6e0] ss:$8 sps:$4 sm:$0xff]  }
 0x16c   : > { %3367 = vmatpush2.bf16.msra.mxu1 %v5219_v5  ;;  %3327 = vmatprep.subr.bf16.mxu0 %v5224_v6  ;;  %v5303_v5 = vld [vmem:[%s6192_s12 + $0x7e0] ss:$8 sps:$4 sm:$0xff]   ;;  %v5308_v6 = vld [vmem:[%s6192_s12 + $0x6d4] ss:$8 sps:$4 sm:$0xff]  }
 0x16d   : > { %3368 = vmatprep.subr.bf16.mxu1 %v5227_v7  ;;  %v5311_v7 = vld [vmem:[%s6192_s12 + $0x7d4] ss:$8 sps:$4 sm:$0xff]  }
 0x16f   : > { %3328 = vmatpush2.bf16.msra.mxu0 %v5222_v8  ;;  %v5306_v8 = vld [vmem:[%s6192_s12 + $0x6d0] ss:$8 sps:$4 sm:$0xff]  }
 0x170   : > { %3369 = vmatpush2.bf16.msra.mxu1 %v5225_v9  ;;  %3329 = vmatprep.subr.bf16.mxu0 %v5230_v10  ;;  %v5309_v9 = vld [vmem:[%s6192_s12 + $0x7d0] ss:$8 sps:$4 sm:$0xff]   ;;  %v5314_v10 = vld [vmem:[%s6192_s12 + $0x6c4] ss:$8 sps:$4 sm:$0xff]  }
 0x171   : > { %3370 = vmatprep.subr.bf16.mxu1 %v5233_v11  ;;  %v5317_v11 = vld [vmem:[%s6192_s12 + $0x7c4] ss:$8 sps:$4 sm:$0xff]  }
 0x173   : > { %3330 = vmatpush2.bf16.msra.mxu0 %v5228_v12  ;;  %v5312_v12 = vld [vmem:[%s6192_s12 + $0x6c0] ss:$8 sps:$4 sm:$0xff]  }
 0x174   : > { %3371 = vmatpush2.bf16.msra.mxu1 %v5231_v13  ;;  %3331 = vmatprep.subr.bf16.mxu0 %v5236_v14  ;;  %v5315_v13 = vld [vmem:[%s6192_s12 + $0x7c0] ss:$8 sps:$4 sm:$0xff]   ;;  %v5320_v14 = vld [vmem:[%s6192_s12 + $0x6b4] ss:$8 sps:$4 sm:$0xff]  }
 0x175   : > { %3372 = vmatprep.subr.bf16.mxu1 %v5239_v15  ;;  %v5323_v15 = vld [vmem:[%s6192_s12 + $0x7b4] ss:$8 sps:$4 sm:$0xff]  }
 0x177   : > { %3332 = vmatpush2.bf16.msra.mxu0 %v5234_v16  ;;  %v5318_v16 = vld [vmem:[%s6192_s12 + $0x6b0] ss:$8 sps:$4 sm:$0xff]  }
 0x178   : > { %3373 = vmatpush2.bf16.msra.mxu1 %v5237_v17  ;;  %3333 = vmatprep.subr.bf16.mxu0 %v5242_v18  ;;  %v5321_v17 = vld [vmem:[%s6192_s12 + $0x7b0] ss:$8 sps:$4 sm:$0xff]   ;;  %v5326_v18 = vld [vmem:[%s6192_s12 + $0x6a4] ss:$8 sps:$4 sm:$0xff]  }
 0x179   : > { %3374 = vmatprep.subr.bf16.mxu1 %v5245_v19  ;;  %v5329_v19 = vld [vmem:[%s6192_s12 + $0x7a4] ss:$8 sps:$4 sm:$0xff]  }
 0x17b   : > { %3334 = vmatpush2.bf16.msra.mxu0 %v5240_v20  ;;  %v5324_v20 = vld [vmem:[%s6192_s12 + $0x6a0] ss:$8 sps:$4 sm:$0xff]  }
 0x17c   : > { %3375 = vmatpush2.bf16.msra.mxu1 %v5243_v21  ;;  %3385 = vmatprep.subr.bf16.mxu0 %v5248_v23  ;;  %v5327_v21 = vld [vmem:[%s6192_s12 + $0x7a0] ss:$8 sps:$4 sm:$0xff]   ;;  %v5335_v23 = vld [vmem:[%s6192_s12 + $0x794] ss:$8 sps:$4 sm:$0xff]  }
 0x17d   : > { %3426 = vmatprep.subr.bf16.mxu1 %v5251_v25  ;;  %v5333_v25 = vld [vmem:[%s6192_s12 + $0x790] ss:$8 sps:$4 sm:$0xff]  }
 0x17e   : > { %3336 = vmatmul.mubr.bf16.vlgmr.msra.gmra.mxu0 %v528_v28  ;;  %v5336_v28 = vld [vmem:[%s6192_s12 + $0x680] ss:$8 sps:$4 sm:$0xff]  }
 0x17f   : > { %3377 = vmatmul.mubr.bf16.vlgmr.msra.gmra.mxu1 %v530_v29  ;;  %3386 = vmatpush1.bf16.msra.mxu0 %v5246_v26  ;;  %v5338_v26 = vld [vmem:[%s6192_s12 + $0x684] ss:$8 sps:$4 sm:$0xff]   ;;  %v5339_v29 = vld [vmem:[%s6192_s12 + $0x780] ss:$8 sps:$4 sm:$0xff]  }
 0x180   : > { %3427 = vmatpush1.bf16.msra.mxu1 %v5249_v27  ;;  %3387 = vmatprep.subr.bf16.mxu0 %v5254_v32  ;;  %v5341_v27 = vld [vmem:[%s6192_s12 + $0x784] ss:$8 sps:$4 sm:$0xff]   ;;  %v507_v32 = vld [vmem:[%s6223_s17 + $0x70] sm:$0xff] }
 0x181   : > { %3428 = vmatprep.subr.bf16.mxu1 %v5257_v33  ;;  %3417 = vmatprep.mubr.bf16.mxu0 %v533_v34  ;;  %v5347_v33 = vld [vmem:[%s6192_s12 + $0x974] ss:$8 sps:$4 sm:$0xff]   ;;  %v5342_v34 = vld [vmem:[%s6192_s12 + $0x870] ss:$8 sps:$4 sm:$0xff]  }
 0x182   : > { %3458 = vmatprep.mubr.bf16.mxu1 %v535_v35  ;;  %v5345_v35 = vld [vmem:[%s6192_s12 + $0x970] ss:$8 sps:$4 sm:$0xff]  }
 0x183   : > { %3388 = vmatpush1.bf16.msra.mxu0 %v5252_v36  ;;  %v532_v36 = vpack.c.bf16 %v505_v30, %v505_v30  ;;  %v5408_v30 = vld [vmem:[%s6192_s12 + $0x8c0] ss:$8 sps:$4 sm:$0xff]  }
 0x184   : > { %3429 = vmatpush1.bf16.msra.mxu1 %v5255_v37  ;;  %3389 = vmatprep.subr.bf16.mxu0 %v5260_v38  ;;  %v534_v37 = vpack.c.bf16 %v507_v32, %v507_v32  ;;  %v510_v38 = vld [vmem:[%s6223_s17 + $0x88] sm:$0xff]  ;;  %v5416_v32 = vld [vmem:[%s6192_s12 + $0x8b4] ss:$8 sps:$4 sm:$0xff]  }
 0x185   : > { %3430 = vmatprep.subr.bf16.mxu1 %v5263_v39  ;;  %v512_v39 = vld [vmem:[%s6223_s17 + $0x98] sm:$0xff] }
 0x187   : > { %3390 = vmatpush1.bf16.msra.mxu0 %v5258_v40  ;;  %v5350_v40 = vld [vmem:[%s6192_s12 + $0x864] ss:$8 sps:$4 sm:$0xff]  }
 0x188   : > { %3431 = vmatpush1.bf16.msra.mxu1 %v5261_v41  ;;  %3391 = vmatprep.subr.bf16.mxu0 %v5266_v42  ;;  %v5353_v41 = vld [vmem:[%s6192_s12 + $0x964] ss:$8 sps:$4 sm:$0xff]   ;;  %v537_v42 = vpack.c.bf16 %v510_v38, %v510_v38  ;;  %v5420_v38 = vld [vmem:[%s6192_s12 + $0x8a0] ss:$8 sps:$4 sm:$0xff]  }
 0x189   : > { %3432 = vmatprep.subr.bf16.mxu1 %v5269_v43  ;;  %v539_v43 = vpack.c.bf16 %v512_v39, %v512_v39  ;;  %v5423_v39 = vld [vmem:[%s6192_s12 + $0x9a0] ss:$8 sps:$4 sm:$0xff]  }
 0x18b   : > { %3392 = vmatpush1.bf16.msra.mxu0 %v5264_v44 }
 0x18c   : > { %3433 = vmatpush1.bf16.msra.mxu1 %v5267_v45  ;;  %3393 = vmatprep.subr.bf16.mxu0 %v5272_v46  ;;  %v5348_v46 = vld [vmem:[%s6192_s12 + $0x860] ss:$8 sps:$4 sm:$0xff]  }
 0x18d   : > { %3434 = vmatprep.subr.bf16.mxu1 %v5275_v47  ;;  %v5351_v47 = vld [vmem:[%s6192_s12 + $0x960] ss:$8 sps:$4 sm:$0xff]  }
 0x18f   : > { %3394 = vmatpush1.bf16.msra.mxu0 %v5270_v48 }
 0x190   : > { %3435 = vmatpush1.bf16.msra.mxu1 %v5273_v49  ;;  %3395 = vmatprep.subr.bf16.mxu0 %v5278_v50  ;;  %v5356_v49 = vld [vmem:[%s6192_s12 + $0x854] ss:$8 sps:$4 sm:$0xff]  }
 0x191   : > { %3436 = vmatprep.subr.bf16.mxu1 %v5281_v51 }
 0x193   : > { %3396 = vmatpush1.bf16.msra.mxu0 %v5276_v52  ;;  %v5359_v52 = vld [vmem:[%s6192_s12 + $0x954] ss:$8 sps:$4 sm:$0xff]  }
 0x194   : > { %3437 = vmatpush1.bf16.msra.mxu1 %v5279_v53  ;;  %3397 = vmatprep.subr.bf16.mxu0 %v5284_v54 }
 0x195   : > { %3438 = vmatprep.subr.bf16.mxu1 %v5287_v55 }
 0x197   : > { %3398 = vmatpush1.bf16.msra.mxu0 %v5282_v56  ;;  %v5354_v56 = vld [vmem:[%s6192_s12 + $0x850] ss:$8 sps:$4 sm:$0xff]  }
 0x198   : > { %3439 = vmatpush1.bf16.msra.mxu1 %v5285_v57  ;;  %3399 = vmatprep.subr.bf16.mxu0 %v5290_v58  ;;  %v5357_v57 = vld [vmem:[%s6192_s12 + $0x950] ss:$8 sps:$4 sm:$0xff]   ;;  %v5362_v58 = vld [vmem:[%s6192_s12 + $0x844] ss:$8 sps:$4 sm:$0xff]  }
 0x199   : > { %3440 = vmatprep.subr.bf16.mxu1 %v5293_v59 }
 0x19b   : > { %3400 = vmatpush1.bf16.msra.mxu0 %v5288_v60  ;;  %v5365_v60 = vld [vmem:[%s6192_s12 + $0x944] ss:$8 sps:$4 sm:$0xff]  }
 0x19c   : > { %3441 = vmatpush1.bf16.msra.mxu1 %v5291_v61  ;;  %3401 = vmatprep.subr.bf16.mxu0 %v5296_v62  ;;  %v5360_v62 = vld [vmem:[%s6192_s12 + $0x840] ss:$8 sps:$4 sm:$0xff]  }
 0x19d   : > { %3442 = vmatprep.subr.bf16.mxu1 %v5299_v63  ;;  %v5363_v63 = vld [vmem:[%s6192_s12 + $0x940] ss:$8 sps:$4 sm:$0xff]  }
 0x19f   : > { %3402 = vmatpush2.bf16.msra.mxu0 %v5294_v0  ;;  %v5368_v0 = vld [vmem:[%s6192_s12 + $0x834] ss:$8 sps:$4 sm:$0xff]  }
 0x1a0   : > { %3443 = vmatpush2.bf16.msra.mxu1 %v5297_v1  ;;  %3403 = vmatprep.subr.bf16.mxu0 %v5302_v2  ;;  %v5371_v1 = vld [vmem:[%s6192_s12 + $0x934] ss:$8 sps:$4 sm:$0xff]   ;;  %v5366_v2 = vld [vmem:[%s6192_s12 + $0x830] ss:$8 sps:$4 sm:$0xff]  }
 0x1a1   : > { %3444 = vmatprep.subr.bf16.mxu1 %v5305_v3  ;;  %v5369_v3 = vld [vmem:[%s6192_s12 + $0x930] ss:$8 sps:$4 sm:$0xff]  }
 0x1a3   : > { %3404 = vmatpush2.bf16.msra.mxu0 %v5300_v4  ;;  %v5374_v4 = vld [vmem:[%s6192_s12 + $0x824] ss:$8 sps:$4 sm:$0xff]  }
 0x1a4   : > { %3445 = vmatpush2.bf16.msra.mxu1 %v5303_v5  ;;  %3405 = vmatprep.subr.bf16.mxu0 %v5308_v6  ;;  %v5377_v5 = vld [vmem:[%s6192_s12 + $0x924] ss:$8 sps:$4 sm:$0xff]   ;;  %v5372_v6 = vld [vmem:[%s6192_s12 + $0x820] ss:$8 sps:$4 sm:$0xff]  }
 0x1a5   : > { %3446 = vmatprep.subr.bf16.mxu1 %v5311_v7  ;;  %v5375_v7 = vld [vmem:[%s6192_s12 + $0x920] ss:$8 sps:$4 sm:$0xff]  }
 0x1a7   : > { %3406 = vmatpush2.bf16.msra.mxu0 %v5306_v8  ;;  %v5380_v8 = vld [vmem:[%s6192_s12 + $0x814] ss:$8 sps:$4 sm:$0xff]  }
 0x1a8   : > { %3447 = vmatpush2.bf16.msra.mxu1 %v5309_v9  ;;  %3407 = vmatprep.subr.bf16.mxu0 %v5314_v10  ;;  %v5383_v9 = vld [vmem:[%s6192_s12 + $0x914] ss:$8 sps:$4 sm:$0xff]   ;;  %v5378_v10 = vld [vmem:[%s6192_s12 + $0x810] ss:$8 sps:$4 sm:$0xff]  }
 0x1a9   : > { %3448 = vmatprep.subr.bf16.mxu1 %v5317_v11  ;;  %v5381_v11 = vld [vmem:[%s6192_s12 + $0x910] ss:$8 sps:$4 sm:$0xff]  }
 0x1ab   : > { %3408 = vmatpush2.bf16.msra.mxu0 %v5312_v12  ;;  %v5386_v12 = vld [vmem:[%s6192_s12 + $0x804] ss:$8 sps:$4 sm:$0xff]  }
 0x1ac   : > { %3449 = vmatpush2.bf16.msra.mxu1 %v5315_v13  ;;  %3409 = vmatprep.subr.bf16.mxu0 %v5320_v14  ;;  %v5389_v13 = vld [vmem:[%s6192_s12 + $0x904] ss:$8 sps:$4 sm:$0xff]   ;;  %v5384_v14 = vld [vmem:[%s6192_s12 + $0x800] ss:$8 sps:$4 sm:$0xff]  }
 0x1ad   : > { %3450 = vmatprep.subr.bf16.mxu1 %v5323_v15  ;;  %v5387_v15 = vld [vmem:[%s6192_s12 + $0x900] ss:$8 sps:$4 sm:$0xff]  }
 0x1af   : > { %3410 = vmatpush2.bf16.msra.mxu0 %v5318_v16  ;;  %v5392_v16 = vld [vmem:[%s6192_s12 + $0x8f4] ss:$8 sps:$4 sm:$0xff]  }
 0x1b0   : > { %3451 = vmatpush2.bf16.msra.mxu1 %v5321_v17  ;;  %3411 = vmatprep.subr.bf16.mxu0 %v5326_v18  ;;  %v5395_v17 = vld [vmem:[%s6192_s12 + $0x9f4] ss:$8 sps:$4 sm:$0xff]   ;;  %v5390_v18 = vld [vmem:[%s6192_s12 + $0x8f0] ss:$8 sps:$4 sm:$0xff]  }
 0x1b1   : > { %3452 = vmatprep.subr.bf16.mxu1 %v5329_v19  ;;  %v5393_v19 = vld [vmem:[%s6192_s12 + $0x9f0] ss:$8 sps:$4 sm:$0xff]  }
 0x1b3   : > { %3412 = vmatpush2.bf16.msra.mxu0 %v5324_v20  ;;  %v5398_v20 = vld [vmem:[%s6192_s12 + $0x8e4] ss:$8 sps:$4 sm:$0xff]  }
 0x1b4   : > { %3453 = vmatpush2.bf16.msra.mxu1 %v5327_v21  ;;  %3413 = vmatprep.subr.bf16.mxu0 %v5332_v22  ;;  %v5401_v21 = vld [vmem:[%s6192_s12 + $0x9e4] ss:$8 sps:$4 sm:$0xff]   ;;  %v5396_v22 = vld [vmem:[%s6192_s12 + $0x8e0] ss:$8 sps:$4 sm:$0xff]  }
 0x1b5   : > { %3454 = vmatprep.subr.bf16.mxu1 %v5335_v23  ;;  %v5399_v23 = vld [vmem:[%s6192_s12 + $0x9e0] ss:$8 sps:$4 sm:$0xff]  }
 0x1b7   : > { %3414 = vmatpush2.bf16.msra.mxu0 %v5330_v24  ;;  %v5404_v24 = vld [vmem:[%s6192_s12 + $0x8d4] ss:$8 sps:$4 sm:$0xff]  }
 0x1b8   : > { %3455 = vmatpush2.bf16.msra.mxu1 %v5333_v25  ;;  %3415 = vmatprep.subr.bf16.mxu0 %v5338_v26  ;;  %v5407_v25 = vld [vmem:[%s6192_s12 + $0x9d4] ss:$8 sps:$4 sm:$0xff]   ;;  %v5402_v26 = vld [vmem:[%s6192_s12 + $0x8d0] ss:$8 sps:$4 sm:$0xff]  }
 0x1b9   : > { %3456 = vmatprep.subr.bf16.mxu1 %v5341_v27  ;;  %v5405_v27 = vld [vmem:[%s6192_s12 + $0x9d0] ss:$8 sps:$4 sm:$0xff]  }
 0x1bb   : > { %3416 = vmatpush2.bf16.msra.mxu0 %v5336_v28  ;;  %v5410_v28 = vld [vmem:[%s6192_s12 + $0x8c4] ss:$8 sps:$4 sm:$0xff]  }
 0x1bc   : > { %3457 = vmatpush2.bf16.msra.mxu1 %v5339_v29  ;;  %3467 = vmatprep.subr.bf16.mxu0 %v5344_v31  ;;  %v5413_v29 = vld [vmem:[%s6192_s12 + $0x9c4] ss:$8 sps:$4 sm:$0xff]   ;;  %v5411_v31 = vld [vmem:[%s6192_s12 + $0x9c0] ss:$8 sps:$4 sm:$0xff]  }
 0x1bd   : > { %3508 = vmatprep.subr.bf16.mxu1 %v5347_v33  ;;  %v5419_v33 = vld [vmem:[%s6192_s12 + $0x9b4] ss:$8 sps:$4 sm:$0xff]  }
 0x1be   : > { %v3173_v44 = vpop.f32.mrf.mxu0  ;;  %3418 = vmatmul.mubr.bf16.vlgmr.msra.gmra.mxu0 %v532_v36  ;;  %v5422_v36 = vld [vmem:[%s6192_s12 + $0x8a4] ss:$8 sps:$4 sm:$0xff]  }
 0x1bf   : > { %v3214_v45 = vpop.f32.mrf.mxu1  ;;  %3459 = vmatmul.mubr.bf16.vlgmr.msra.gmra.mxu1 %v534_v37  ;;  %3468 = vmatpush1.bf16.msra.mxu0 %v5342_v34  ;;  %v5414_v34 = vld [vmem:[%s6192_s12 + $0x8b0] ss:$8 sps:$4 sm:$0xff]   ;;  %v5425_v37 = vld [vmem:[%s6192_s12 + $0x9a4] ss:$8 sps:$4 sm:$0xff]  }
 0x1c0   : > { %v6509_v48 = vadd.f32 %v3214_v45, %v3173_v44  ;;  %3509 = vmatpush1.bf16.msra.mxu1 %v5345_v35  ;;  %v3175_v50 = vpop.f32.mrf.mxu0  ;;  %3469 = vmatprep.subr.bf16.mxu0 %v5350_v40  ;;  %v5417_v35 = vld [vmem:[%s6192_s12 + $0x9b0] ss:$8 sps:$4 sm:$0xff]   ;;  %v5428_v40 = vld [vmem:[%s6192_s12 + $0x894] ss:$8 sps:$4 sm:$0xff]   ;;  %v5434_v44 = vld [vmem:[%s6192_s12 + $0x884] ss:$8 sps:$4 sm:$0xff]  }
 0x1c1   : > { %v3216_v51 = vpop.f32.mrf.mxu1  ;;  %3510 = vmatprep.subr.bf16.mxu1 %v5353_v41  ;;  %3499 = vmatprep.mubr.bf16.mxu0 %v537_v42  ;;  %v5431_v41 = vld [vmem:[%s6192_s12 + $0x994] ss:$8 sps:$4 sm:$0xff]   ;;  %v5426_v42 = vld [vmem:[%s6192_s12 + $0x890] ss:$8 sps:$4 sm:$0xff]   ;;  %v5437_v45 = vld [vmem:[%s6192_s12 + $0x984] ss:$8 sps:$4 sm:$0xff]  }
 0x1c2   : > { %v6513_v53 = vadd.f32 %v3216_v51, %v3175_v50  ;;  %3540 = vmatprep.mubr.bf16.mxu1 %v539_v43  ;;  %v3177_v54 = vpop.f32.mrf.mxu0  ;;  %v5429_v43 = vld [vmem:[%s6192_s12 + $0x990] ss:$8 sps:$4 sm:$0xff]   ;;  %v5440_v51 = vld [vmem:[%s6192_s12 + $0xa74] ss:$8 sps:$4 sm:$0xff]  }
 0x1c3   : > { %v3218_v55 = vpop.f32.mrf.mxu1  ;;  %3470 = vmatpush1.bf16.msra.mxu0 %v5348_v46  ;;  %v5432_v46 = vld [vmem:[%s6192_s12 + $0x880] ss:$8 sps:$4 sm:$0xff]   ;;  %v511_v50 = vld [vmem:[%s6223_s17 + $0x90] sm:$0xff] }
 0x1c4   : > { %3511 = vmatpush1.bf16.msra.mxu1 %v5351_v47  ;;  %v3178_v59 = vpop.f32.mrf.mxu0  ;;  %3471 = vmatprep.subr.bf16.mxu0 %v5356_v49  ;;  %v5435_v47 = vld [vmem:[%s6192_s12 + $0x980] ss:$8 sps:$4 sm:$0xff]   ;;  %v538_v55 = vpack.c.bf16 %v511_v50, %v511_v50  ;;  %v5509_v50 = vld [vmem:[%s6192_s12 + $0xbc4] ss:$8 sps:$4 sm:$0xff]  }
 0x1c5   : > { %3512 = vmatprep.subr.bf16.mxu1 %v5359_v52  ;;  %v3219_v61 = vpop.f32.mrf.mxu1  ;;  %v509_v49 = vld [vmem:[%s6223_s17 + $0x80] sm:$0xff]  ;;  %v5443_v52 = vld [vmem:[%s6192_s12 + $0xb74] ss:$8 sps:$4 sm:$0xff]   ;;  %v5441_v59 = vld [vmem:[%s6192_s12 + $0xb70] ss:$8 sps:$4 sm:$0xff]  }
 0x1c6   : > { %v536_v54 = vpack.c.bf16 %v509_v49, %v509_v49  ;;  %v5449_v61 = vld [vmem:[%s6192_s12 + $0xb64] ss:$8 sps:$4 sm:$0xff]  }
 0x1c7   : > { %3472 = vmatpush1.bf16.msra.mxu0 %v5354_v56  ;;  %v514_v56 = vld [vmem:[%s6223_s17 + $0xa8] sm:$0xff] }
 0x1c8   : > { %3513 = vmatpush1.bf16.msra.mxu1 %v5357_v57  ;;  %3473 = vmatprep.subr.bf16.mxu0 %v5362_v58  ;;  %v516_v57 = vld [vmem:[%s6223_s17 + $0xb8] sm:$0xff]  ;;  %v5506_v49 = vld [vmem:[%s6192_s12 + $0xac4] ss:$8 sps:$4 sm:$0xff]  }
 0x1c9   : > { %3514 = vmatprep.subr.bf16.mxu1 %v5365_v60  ;;  %v5438_v58 = vld [vmem:[%s6192_s12 + $0xa70] ss:$8 sps:$4 sm:$0xff]   ;;  %v5446_v60 = vld [vmem:[%s6192_s12 + $0xa64] ss:$8 sps:$4 sm:$0xff]  }
 0x1cb   : > { %3474 = vmatpush1.bf16.msra.mxu0 %v5360_v62  ;;  %v541_v62 = vpack.c.bf16 %v514_v56, %v514_v56  ;;  %v5510_v56 = vld [vmem:[%s6192_s12 + $0xab0] ss:$8 sps:$4 sm:$0xff]  }
 0x1cc   : > { %3515 = vmatpush1.bf16.msra.mxu1 %v5363_v63  ;;  %3475 = vmatprep.subr.bf16.mxu0 %v5368_v0  ;;  %v543_v63 = vpack.c.bf16 %v516_v57, %v516_v57  ;;  %v5513_v57 = vld [vmem:[%s6192_s12 + $0xbb0] ss:$8 sps:$4 sm:$0xff]  }
 0x1cd   : > { %3516 = vmatprep.subr.bf16.mxu1 %v5371_v1 }
 0x1cf   : > { %3476 = vmatpush1.bf16.msra.mxu0 %v5366_v2 }
 0x1d0   : > { %3517 = vmatpush1.bf16.msra.mxu1 %v5369_v3  ;;  %3477 = vmatprep.subr.bf16.mxu0 %v5374_v4  ;;  %v5444_v3 = vld [vmem:[%s6192_s12 + $0xa60] ss:$8 sps:$4 sm:$0xff]  }
 0x1d1   : > { %3518 = vmatprep.subr.bf16.mxu1 %v5377_v5  ;;  %v5447_v4 = vld [vmem:[%s6192_s12 + $0xb60] ss:$8 sps:$4 sm:$0xff]  }
 0x1d3   : > { %3478 = vmatpush1.bf16.msra.mxu0 %v5372_v6 }
 0x1d4   : > { %3519 = vmatpush1.bf16.msra.mxu1 %v5375_v7  ;;  %3479 = vmatprep.subr.bf16.mxu0 %v5380_v8  ;;  %v5452_v7 = vld [vmem:[%s6192_s12 + $0xa54] ss:$8 sps:$4 sm:$0xff]  }
 0x1d5   : > { %3520 = vmatprep.subr.bf16.mxu1 %v5383_v9  ;;  %v5455_v8 = vld [vmem:[%s6192_s12 + $0xb54] ss:$8 sps:$4 sm:$0xff]  }
 0x1d7   : > { %3480 = vmatpush1.bf16.msra.mxu0 %v5378_v10 }
 0x1d8   : > { %3521 = vmatpush1.bf16.msra.mxu1 %v5381_v11  ;;  %3481 = vmatprep.subr.bf16.mxu0 %v5386_v12 }
 0x1d9   : > { %3522 = vmatprep.subr.bf16.mxu1 %v5389_v13  ;;  %v5450_v13 = vld [vmem:[%s6192_s12 + $0xa50] ss:$8 sps:$4 sm:$0xff]  }
 0x1db   : > { %3482 = vmatpush1.bf16.msra.mxu0 %v5384_v14  ;;  %v5453_v14 = vld [vmem:[%s6192_s12 + $0xb50] ss:$8 sps:$4 sm:$0xff]  }
 0x1dc   : > { %3523 = vmatpush1.bf16.msra.mxu1 %v5387_v15  ;;  %3483 = vmatprep.subr.bf16.mxu0 %v5392_v16  ;;  %v5461_v16 = vld [vmem:[%s6192_s12 + $0xb44] ss:$8 sps:$4 sm:$0xff]  }
 0x1dd   : > { %3524 = vmatprep.subr.bf16.mxu1 %v5395_v17 }
 0x1df   : > { %3484 = vmatpush2.bf16.msra.mxu0 %v5390_v18  ;;  %v5456_v18 = vld [vmem:[%s6192_s12 + $0xa40] ss:$8 sps:$4 sm:$0xff]  }
 0x1e0   : > { %3525 = vmatpush2.bf16.msra.mxu1 %v5393_v19  ;;  %3485 = vmatprep.subr.bf16.mxu0 %v5398_v20  ;;  %v5459_v19 = vld [vmem:[%s6192_s12 + $0xb40] ss:$8 sps:$4 sm:$0xff]   ;;  %v5464_v20 = vld [vmem:[%s6192_s12 + $0xa34] ss:$8 sps:$4 sm:$0xff]  }
 0x1e1   : > { %3526 = vmatprep.subr.bf16.mxu1 %v5401_v21  ;;  %v5467_v21 = vld [vmem:[%s6192_s12 + $0xb34] ss:$8 sps:$4 sm:$0xff]  }
 0x1e3   : > { %3486 = vmatpush2.bf16.msra.mxu0 %v5396_v22  ;;  %v5462_v22 = vld [vmem:[%s6192_s12 + $0xa30] ss:$8 sps:$4 sm:$0xff]  }
 0x1e4   : > { %3527 = vmatpush2.bf16.msra.mxu1 %v5399_v23  ;;  %3487 = vmatprep.subr.bf16.mxu0 %v5404_v24  ;;  %v5465_v23 = vld [vmem:[%s6192_s12 + $0xb30] ss:$8 sps:$4 sm:$0xff]   ;;  %v5470_v24 = vld [vmem:[%s6192_s12 + $0xa24] ss:$8 sps:$4 sm:$0xff]  }
 0x1e5   : > { %3528 = vmatprep.subr.bf16.mxu1 %v5407_v25  ;;  %v5473_v25 = vld [vmem:[%s6192_s12 + $0xb24] ss:$8 sps:$4 sm:$0xff]  }
 0x1e7   : > { %3488 = vmatpush2.bf16.msra.mxu0 %v5402_v26  ;;  %v5468_v26 = vld [vmem:[%s6192_s12 + $0xa20] ss:$8 sps:$4 sm:$0xff]  }
 0x1e8   : > { %3529 = vmatpush2.bf16.msra.mxu1 %v5405_v27  ;;  %3489 = vmatprep.subr.bf16.mxu0 %v5410_v28  ;;  %v5471_v27 = vld [vmem:[%s6192_s12 + $0xb20] ss:$8 sps:$4 sm:$0xff]   ;;  %v5476_v28 = vld [vmem:[%s6192_s12 + $0xa14] ss:$8 sps:$4 sm:$0xff]  }
 0x1e9   : > { %3530 = vmatprep.subr.bf16.mxu1 %v5413_v29  ;;  %v5479_v29 = vld [vmem:[%s6192_s12 + $0xb14] ss:$8 sps:$4 sm:$0xff]  }
 0x1eb   : > { %3490 = vmatpush2.bf16.msra.mxu0 %v5408_v30  ;;  %v5474_v30 = vld [vmem:[%s6192_s12 + $0xa10] ss:$8 sps:$4 sm:$0xff]  }
 0x1ec   : > { %3531 = vmatpush2.bf16.msra.mxu1 %v5411_v31  ;;  %3491 = vmatprep.subr.bf16.mxu0 %v5416_v32  ;;  %v5477_v31 = vld [vmem:[%s6192_s12 + $0xb10] ss:$8 sps:$4 sm:$0xff]   ;;  %v5482_v32 = vld [vmem:[%s6192_s12 + $0xa04] ss:$8 sps:$4 sm:$0xff]  }
 0x1ed   : > { %3532 = vmatprep.subr.bf16.mxu1 %v5419_v33  ;;  %v5485_v33 = vld [vmem:[%s6192_s12 + $0xb04] ss:$8 sps:$4 sm:$0xff]  }
 0x1ef   : > { %3492 = vmatpush2.bf16.msra.mxu0 %v5414_v34  ;;  %v5480_v34 = vld [vmem:[%s6192_s12 + $0xa00] ss:$8 sps:$4 sm:$0xff]  }
 0x1f0   : > { %3533 = vmatpush2.bf16.msra.mxu1 %v5417_v35  ;;  %3493 = vmatprep.subr.bf16.mxu0 %v5422_v36  ;;  %v5483_v35 = vld [vmem:[%s6192_s12 + $0xb00] ss:$8 sps:$4 sm:$0xff]   ;;  %v5488_v36 = vld [vmem:[%s6192_s12 + $0xaf4] ss:$8 sps:$4 sm:$0xff]  }
 0x1f1   : > { %3534 = vmatprep.subr.bf16.mxu1 %v5425_v37  ;;  %v5491_v37 = vld [vmem:[%s6192_s12 + $0xbf4] ss:$8 sps:$4 sm:$0xff]  }
 0x1f3   : > { %3494 = vmatpush2.bf16.msra.mxu0 %v5420_v38  ;;  %v5486_v38 = vld [vmem:[%s6192_s12 + $0xaf0] ss:$8 sps:$4 sm:$0xff]  }
 0x1f4   : > { %3535 = vmatpush2.bf16.msra.mxu1 %v5423_v39  ;;  %3495 = vmatprep.subr.bf16.mxu0 %v5428_v40  ;;  %v5489_v39 = vld [vmem:[%s6192_s12 + $0xbf0] ss:$8 sps:$4 sm:$0xff]   ;;  %v5494_v40 = vld [vmem:[%s6192_s12 + $0xae4] ss:$8 sps:$4 sm:$0xff]  }
 0x1f5   : > { %3536 = vmatprep.subr.bf16.mxu1 %v5431_v41  ;;  %v5497_v41 = vld [vmem:[%s6192_s12 + $0xbe4] ss:$8 sps:$4 sm:$0xff]  }
 0x1f7   : > { %3496 = vmatpush2.bf16.msra.mxu0 %v5426_v42  ;;  %v5492_v42 = vld [vmem:[%s6192_s12 + $0xae0] ss:$8 sps:$4 sm:$0xff]  }
 0x1f8   : > { %3537 = vmatpush2.bf16.msra.mxu1 %v5429_v43  ;;  %3497 = vmatprep.subr.bf16.mxu0 %v5434_v44  ;;  %v5495_v43 = vld [vmem:[%s6192_s12 + $0xbe0] ss:$8 sps:$4 sm:$0xff]   ;;  %v5500_v44 = vld [vmem:[%s6192_s12 + $0xad4] ss:$8 sps:$4 sm:$0xff]  }
 0x1f9   : > { %3538 = vmatprep.subr.bf16.mxu1 %v5437_v45  ;;  %v5503_v45 = vld [vmem:[%s6192_s12 + $0xbd4] ss:$8 sps:$4 sm:$0xff]  }
 0x1fb   : > { %3498 = vmatpush2.bf16.msra.mxu0 %v5432_v46  ;;  %v5498_v46 = vld [vmem:[%s6192_s12 + $0xad0] ss:$8 sps:$4 sm:$0xff]  }
 0x1fc   : > { %3539 = vmatpush2.bf16.msra.mxu1 %v5435_v47  ;;  %3549 = vmatprep.subr.bf16.mxu0 %v5440_v51  ;;  %v5501_v47 = vld [vmem:[%s6192_s12 + $0xbd0] ss:$8 sps:$4 sm:$0xff]   ;;  %v5504_v51 = vld [vmem:[%s6192_s12 + $0xac0] ss:$8 sps:$4 sm:$0xff]  }
 0x1fd   : > { %3590 = vmatprep.subr.bf16.mxu1 %v5443_v52  ;;  %v5507_v52 = vld [vmem:[%s6192_s12 + $0xbc0] ss:$8 sps:$4 sm:$0xff]  }
 0x1fe   : > { %v3255_v0 = vpop.f32.mrf.mxu0  ;;  %3500 = vmatmul.mubr.bf16.vlgmr.msra.gmra.mxu0 %v536_v54  ;;  %v5512_v54 = vld [vmem:[%s6192_s12 + $0xab4] ss:$8 sps:$4 sm:$0xff]  }
 0x1ff   : > { %v3296_v1 = vpop.f32.mrf.mxu1  ;;  %3541 = vmatmul.mubr.bf16.vlgmr.msra.gmra.mxu1 %v538_v55  ;;  %v3256_v2 = vadd.f32 %v3255_v0, %v6509_v48  ;;  %3550 = vmatpush1.bf16.msra.mxu0 %v5438_v58  ;;  %v5515_v55 = vld [vmem:[%s6192_s12 + $0xbb4] ss:$8 sps:$4 sm:$0xff]   ;;  %v5518_v58 = vld [vmem:[%s6192_s12 + $0xaa4] ss:$8 sps:$4 sm:$0xff]   ;;  %v5522_v0 = vld [vmem:[%s6192_s12 + $0xa90] ss:$8 sps:$4 sm:$0xff]  }
 0x200   : > { %3591 = vmatpush1.bf16.msra.mxu1 %v5441_v59  ;;  %v3257_v5 = vpop.f32.mrf.mxu0  ;;  %3551 = vmatprep.subr.bf16.mxu0 %v5446_v60  ;;  %v5521_v59 = vld [vmem:[%s6192_s12 + $0xba4] ss:$8 sps:$4 sm:$0xff]   ;;  %v5516_v60 = vld [vmem:[%s6192_s12 + $0xaa0] ss:$8 sps:$4 sm:$0xff]  }
 0x201   : > { %v3298_v6 = vpop.f32.mrf.mxu1  ;;  %3592 = vmatprep.subr.bf16.mxu1 %v5449_v61  ;;  %v3258_v9 = vadd.f32 %v3257_v5, %v6513_v53  ;;  %v6585_v10 = vadd.f32 %v3296_v1, %v3256_v2  ;;  %3581 = vmatprep.mubr.bf16.mxu0 %v541_v62  ;;  %v5458_v53 = vld [vmem:[%s6192_s12 + $0xa44] ss:$8 sps:$4 sm:$0xff]   ;;  %v5519_v61 = vld [vmem:[%s6192_s12 + $0xba0] ss:$8 sps:$4 sm:$0xff]   ;;  %v5524_v62 = vld [vmem:[%s6192_s12 + $0xa94] ss:$8 sps:$4 sm:$0xff]  }
 0x202   : > { %3622 = vmatprep.mubr.bf16.mxu1 %v543_v63  ;;  %v3259_v48 = vpop.f32.mrf.mxu0  ;;  %v5527_v63 = vld [vmem:[%s6192_s12 + $0xb94] ss:$8 sps:$4 sm:$0xff]   ;;  %v5525_v1 = vld [vmem:[%s6192_s12 + $0xb90] ss:$8 sps:$4 sm:$0xff]   ;;  %v5530_v2 = vld [vmem:[%s6192_s12 + $0xa84] ss:$8 sps:$4 sm:$0xff]  }
 0x203   : > { %v3300_v11 = vpop.f32.mrf.mxu1  ;;  %v6587_v12 = vadd.f32 %v3298_v6, %v3258_v9  ;;  %3552 = vmatpush1.bf16.msra.mxu0 %v5444_v3  ;;  %v5533_v3 = vld [vmem:[%s6192_s12 + $0xb84] ss:$8 sps:$4 sm:$0xff]   ;;  %v5531_v5 = vld [vmem:[%s6192_s12 + $0xb80] ss:$8 sps:$4 sm:$0xff]   ;;  %v5560_v9 = vld [vmem:[%s6192_s12 + $0xd74] ss:$8 sps:$4 sm:$0xff]  }
 0x204   : > { %3593 = vmatpush1.bf16.msra.mxu1 %v5447_v4  ;;  %v3260_v15 = vpop.f32.mrf.mxu0  ;;  %3553 = vmatprep.subr.bf16.mxu0 %v5452_v7  ;;  %v5528_v4 = vld [vmem:[%s6192_s12 + $0xa80] ss:$8 sps:$4 sm:$0xff]   ;;  %v515_v7 = vld [vmem:[%s6223_s17 + $0xb0] sm:$0xff] }
 0x205   : > { %3594 = vmatprep.subr.bf16.mxu1 %v5455_v8  ;;  %v3301_v17 = vpop.f32.mrf.mxu1  ;;  %v513_v6 = vld [vmem:[%s6223_s17 + $0xa0] sm:$0xff]  ;;  %v5536_v8 = vld [vmem:[%s6192_s12 + $0xc74] ss:$8 sps:$4 sm:$0xff]   ;;  %v542_v11 = vpack.c.bf16 %v515_v7, %v515_v7  ;;  %v5558_v15 = vld [vmem:[%s6192_s12 + $0xd70] ss:$8 sps:$4 sm:$0xff]  }
 0x206   : > { %v540_v48 = vpack.c.bf16 %v513_v6, %v513_v6  ;;  %v5591_v6 = vld [vmem:[%s6192_s12 + $0xca0] ss:$8 sps:$4 sm:$0xff]   ;;  %v5599_v7 = vld [vmem:[%s6192_s12 + $0xc94] ss:$8 sps:$4 sm:$0xff]  }
 0x207   : > { %3554 = vmatpush1.bf16.msra.mxu0 %v5450_v13  ;;  %v518_v13 = vld [vmem:[%s6223_s17 + $0xc8] sm:$0xff] }
 0x208   : > { %3595 = vmatpush1.bf16.msra.mxu1 %v5453_v14  ;;  %3555 = vmatprep.subr.bf16.mxu0 %v5458_v53  ;;  %v5534_v14 = vld [vmem:[%s6192_s12 + $0xc70] ss:$8 sps:$4 sm:$0xff]   ;;  %v5539_v53 = vld [vmem:[%s6192_s12 + $0xc64] ss:$8 sps:$4 sm:$0xff]   ;;  %v545_v17 = vpack.c.bf16 %v518_v13, %v518_v13 }
 0x209   : > { %3596 = vmatprep.subr.bf16.mxu1 %v5461_v16  ;;  %v5566_v16 = vld [vmem:[%s6192_s12 + $0xd64] ss:$8 sps:$4 sm:$0xff]  }
 0x20b   : > { %3556 = vmatpush1.bf16.msra.mxu0 %v5456_v18 }
 0x20c   : > { %3597 = vmatpush1.bf16.msra.mxu1 %v5459_v19  ;;  %3557 = vmatprep.subr.bf16.mxu0 %v5464_v20 }
 0x20d   : > { %3598 = vmatprep.subr.bf16.mxu1 %v5467_v21  ;;  %v5537_v21 = vld [vmem:[%s6192_s12 + $0xc60] ss:$8 sps:$4 sm:$0xff]  }
 0x20f   : > { %3558 = vmatpush1.bf16.msra.mxu0 %v5462_v22  ;;  %v5564_v22 = vld [vmem:[%s6192_s12 + $0xd60] ss:$8 sps:$4 sm:$0xff]  }
 0x210   : > { %3599 = vmatpush1.bf16.msra.mxu1 %v5465_v23  ;;  %3559 = vmatprep.subr.bf16.mxu0 %v5470_v24 }
 0x211   : > { %3600 = vmatprep.subr.bf16.mxu1 %v5473_v25  ;;  %v5542_v25 = vld [vmem:[%s6192_s12 + $0xc54] ss:$8 sps:$4 sm:$0xff]  }
 0x213   : > { %3560 = vmatpush1.bf16.msra.mxu0 %v5468_v26  ;;  %v5572_v26 = vld [vmem:[%s6192_s12 + $0xd54] ss:$8 sps:$4 sm:$0xff]  }
 0x214   : > { %3601 = vmatpush1.bf16.msra.mxu1 %v5471_v27  ;;  %3561 = vmatprep.subr.bf16.mxu0 %v5476_v28 }
 0x215   : > { %3602 = vmatprep.subr.bf16.mxu1 %v5479_v29  ;;  %v5931_v29 = vmov 0  }
 0x217   : > { %3562 = vmatpush1.bf16.msra.mxu0 %v5474_v30 }
 0x218   : > { %3603 = vmatpush1.bf16.msra.mxu1 %v5477_v31  ;;  %3563 = vmatprep.subr.bf16.mxu0 %v5482_v32  ;;  %v5540_v32 = vld [vmem:[%s6192_s12 + $0xc50] ss:$8 sps:$4 sm:$0xff]  }
 0x219   : > { %3604 = vmatprep.subr.bf16.mxu1 %v5485_v33  ;;  %v5570_v33 = vld [vmem:[%s6192_s12 + $0xd50] ss:$8 sps:$4 sm:$0xff]  }
 0x21b   : > { %3564 = vmatpush1.bf16.msra.mxu0 %v5480_v34  ;;  %v5545_v34 = vld [vmem:[%s6192_s12 + $0xc44] ss:$8 sps:$4 sm:$0xff]  }
 0x21c   : > { %3605 = vmatpush1.bf16.msra.mxu1 %v5483_v35  ;;  %3565 = vmatprep.subr.bf16.mxu0 %v5488_v36  ;;  %v5578_v36 = vld [vmem:[%s6192_s12 + $0xd44] ss:$8 sps:$4 sm:$0xff]  }
 0x21d   : > { %3606 = vmatprep.subr.bf16.mxu1 %v5491_v37  ;;  %v5543_v37 = vld [vmem:[%s6192_s12 + $0xc40] ss:$8 sps:$4 sm:$0xff]  }
 0x21f   : > { %3566 = vmatpush2.bf16.msra.mxu0 %v5486_v38  ;;  %v5576_v38 = vld [vmem:[%s6192_s12 + $0xd40] ss:$8 sps:$4 sm:$0xff]  }
 0x220   : > { %3607 = vmatpush2.bf16.msra.mxu1 %v5489_v39  ;;  %3567 = vmatprep.subr.bf16.mxu0 %v5494_v40  ;;  %v5548_v39 = vld [vmem:[%s6192_s12 + $0xc34] ss:$8 sps:$4 sm:$0xff]  }
 0x221   : > { %3608 = vmatprep.subr.bf16.mxu1 %v5497_v41  ;;  %v5584_v40 = vld [vmem:[%s6192_s12 + $0xd34] ss:$8 sps:$4 sm:$0xff]   ;;  %v5546_v41 = vld [vmem:[%s6192_s12 + $0xc30] ss:$8 sps:$4 sm:$0xff]  }
 0x223   : > { %3568 = vmatpush2.bf16.msra.mxu0 %v5492_v42  ;;  %v5582_v42 = vld [vmem:[%s6192_s12 + $0xd30] ss:$8 sps:$4 sm:$0xff]  }
 0x224   : > { %3609 = vmatpush2.bf16.msra.mxu1 %v5495_v43  ;;  %3569 = vmatprep.subr.bf16.mxu0 %v5500_v44  ;;  %v5551_v43 = vld [vmem:[%s6192_s12 + $0xc24] ss:$8 sps:$4 sm:$0xff]  }
 0x225   : > { %3610 = vmatprep.subr.bf16.mxu1 %v5503_v45  ;;  %v5590_v44 = vld [vmem:[%s6192_s12 + $0xd24] ss:$8 sps:$4 sm:$0xff]   ;;  %v5549_v45 = vld [vmem:[%s6192_s12 + $0xc20] ss:$8 sps:$4 sm:$0xff]  }
 0x227   : > { %3570 = vmatpush2.bf16.msra.mxu0 %v5498_v46  ;;  %v5588_v46 = vld [vmem:[%s6192_s12 + $0xd20] ss:$8 sps:$4 sm:$0xff]  }
 0x228   : > { %3611 = vmatpush2.bf16.msra.mxu1 %v5501_v47  ;;  %3571 = vmatprep.subr.bf16.mxu0 %v5506_v49  ;;  %v5554_v47 = vld [vmem:[%s6192_s12 + $0xc14] ss:$8 sps:$4 sm:$0xff]  }
 0x229   : > { %3612 = vmatprep.subr.bf16.mxu1 %v5509_v50  ;;  %v5596_v49 = vld [vmem:[%s6192_s12 + $0xd14] ss:$8 sps:$4 sm:$0xff]   ;;  %v5552_v50 = vld [vmem:[%s6192_s12 + $0xc10] ss:$8 sps:$4 sm:$0xff]  }
 0x22b   : > { %3572 = vmatpush2.bf16.msra.mxu0 %v5504_v51  ;;  %v5594_v51 = vld [vmem:[%s6192_s12 + $0xd10] ss:$8 sps:$4 sm:$0xff]  }
 0x22c   : > { %3613 = vmatpush2.bf16.msra.mxu1 %v5507_v52  ;;  %3573 = vmatprep.subr.bf16.mxu0 %v5512_v54  ;;  %v5557_v52 = vld [vmem:[%s6192_s12 + $0xc04] ss:$8 sps:$4 sm:$0xff]  }
 0x22d   : > { %3614 = vmatprep.subr.bf16.mxu1 %v5515_v55  ;;  %v5602_v54 = vld [vmem:[%s6192_s12 + $0xd04] ss:$8 sps:$4 sm:$0xff]   ;;  %v5555_v55 = vld [vmem:[%s6192_s12 + $0xc00] ss:$8 sps:$4 sm:$0xff]  }
 0x22f   : > { %3574 = vmatpush2.bf16.msra.mxu0 %v5510_v56  ;;  %v5600_v56 = vld [vmem:[%s6192_s12 + $0xd00] ss:$8 sps:$4 sm:$0xff]  }
 0x230   : > { %3615 = vmatpush2.bf16.msra.mxu1 %v5513_v57  ;;  %3575 = vmatprep.subr.bf16.mxu0 %v5518_v58  ;;  %v519_v57 = vld [vmem:[%s6223_s17 + $0xd0] sm:$0xff] }
 0x231   : > { %3616 = vmatprep.subr.bf16.mxu1 %v5521_v59  ;;  %v5563_v58 = vld [vmem:[%s6192_s12 + $0xcf4] ss:$8 sps:$4 sm:$0xff]   ;;  %v546_v59 = vpack.c.bf16 %v519_v57, %v519_v57 }
 0x233   : > { %3576 = vmatpush2.bf16.msra.mxu0 %v5516_v60  ;;  %v5561_v60 = vld [vmem:[%s6192_s12 + $0xcf0] ss:$8 sps:$4 sm:$0xff]  }
 0x234   : > { %3617 = vmatpush2.bf16.msra.mxu1 %v5519_v61  ;;  %3577 = vmatprep.subr.bf16.mxu0 %v5524_v62  ;;  %v5569_v61 = vld [vmem:[%s6192_s12 + $0xce4] ss:$8 sps:$4 sm:$0xff]   ;;  %v5567_v62 = vld [vmem:[%s6192_s12 + $0xce0] ss:$8 sps:$4 sm:$0xff]  }
 0x235   : > { %3618 = vmatprep.subr.bf16.mxu1 %v5527_v63  ;;  %v5575_v63 = vld [vmem:[%s6192_s12 + $0xcd4] ss:$8 sps:$4 sm:$0xff]  }
 0x237   : > { %3578 = vmatpush2.bf16.msra.mxu0 %v5522_v0  ;;  %v5573_v0 = vld [vmem:[%s6192_s12 + $0xcd0] ss:$8 sps:$4 sm:$0xff]  }
 0x238   : > { %3619 = vmatpush2.bf16.msra.mxu1 %v5525_v1  ;;  %3579 = vmatprep.subr.bf16.mxu0 %v5530_v2  ;;  %v5581_v1 = vld [vmem:[%s6192_s12 + $0xcc4] ss:$8 sps:$4 sm:$0xff]   ;;  %v5579_v2 = vld [vmem:[%s6192_s12 + $0xcc0] ss:$8 sps:$4 sm:$0xff]  }
 0x239   : > { %3620 = vmatprep.subr.bf16.mxu1 %v5533_v3  ;;  %v5587_v3 = vld [vmem:[%s6192_s12 + $0xcb4] ss:$8 sps:$4 sm:$0xff]  }
 0x23b   : > { %3580 = vmatpush2.bf16.msra.mxu0 %v5528_v4  ;;  %v5585_v4 = vld [vmem:[%s6192_s12 + $0xcb0] ss:$8 sps:$4 sm:$0xff]  }
 0x23c   : > { %3621 = vmatpush2.bf16.msra.mxu1 %v5531_v5  ;;  %3631 = vmatprep.subr.bf16.mxu0 %v5536_v8  ;;  %v5593_v5 = vld [vmem:[%s6192_s12 + $0xca4] ss:$8 sps:$4 sm:$0xff]   ;;  %v5597_v8 = vld [vmem:[%s6192_s12 + $0xc90] ss:$8 sps:$4 sm:$0xff]  }
 0x23d   : > { %3672 = vmatprep.subr.bf16.mxu1 %v5560_v9  ;;  %v5605_v9 = vld [vmem:[%s6192_s12 + $0xc84] ss:$8 sps:$4 sm:$0xff]  }
 0x23e   : > { %v3337_v18 = vpop.f32.mrf.mxu0  ;;  %3582 = vmatmul.mubr.bf16.vlgmr.msra.gmra.mxu0 %v540_v48  ;;  %v5603_v48 = vld [vmem:[%s6192_s12 + $0xc80] ss:$8 sps:$4 sm:$0xff]  }
 0x23f   : > { %v3378_v19 = vpop.f32.mrf.mxu1  ;;  %3623 = vmatmul.mubr.bf16.vlgmr.msra.gmra.mxu1 %v542_v11  ;;  %v3338_v20 = vadd.f32 %v3337_v18, %v6585_v10  ;;  %3632 = vmatpush1.bf16.msra.mxu0 %v5534_v14  ;;  %v517_v11 = vld [vmem:[%s6223_s17 + $0xc0] sm:$0xff] }
 0x240   : > { %3673 = vmatpush1.bf16.msra.mxu1 %v5558_v15  ;;  %v3339_v23 = vpop.f32.mrf.mxu0  ;;  %3633 = vmatprep.subr.bf16.mxu0 %v5539_v53  ;;  %v544_v13 = vpack.c.bf16 %v517_v11, %v517_v11 }
 0x241   : > { %v3380_v24 = vpop.f32.mrf.mxu1  ;;  %3674 = vmatprep.subr.bf16.mxu1 %v5566_v16  ;;  %v3340_v27 = vadd.f32 %v3339_v23, %v6587_v12  ;;  %v6658_v28 = vadd.f32 %v3378_v19, %v3338_v20  ;;  %3704 = vmatprep.mubr.bf16.mxu1 %v5931_v29 }
 0x242   : > { %3663 = vmatprep.mubr.bf16.mxu0 %v545_v17  ;;  %v3341_v10 = vpop.f32.mrf.mxu0 }
 0x243   : > { %v3382_v30 = vpop.f32.mrf.mxu1  ;;  %v6660_v31 = vadd.f32 %v3380_v24, %v3340_v27  ;;  %3634 = vmatpush1.bf16.msra.mxu0 %v5537_v21 }
 0x244   : > { %3675 = vmatpush1.bf16.msra.mxu1 %v5564_v22  ;;  %v3342_v12 = vpop.f32.mrf.mxu0  ;;  %3635 = vmatprep.subr.bf16.mxu0 %v5542_v25 }
 0x245   : > { %v3383_v35 = vpop.f32.mrf.mxu1  ;;  %3676 = vmatprep.subr.bf16.mxu1 %v5572_v26 }
 0x247   : > { %3636 = vmatpush1.bf16.msra.mxu0 %v5540_v32 }
 0x248   : > { %3677 = vmatpush1.bf16.msra.mxu1 %v5570_v33  ;;  %3637 = vmatprep.subr.bf16.mxu0 %v5545_v34 }
 0x249   : > { %3678 = vmatprep.subr.bf16.mxu1 %v5578_v36 }
 0x24b   : > { %3638 = vmatpush1.bf16.msra.mxu0 %v5543_v37 }
 0x24c   : > { %3679 = vmatpush1.bf16.msra.mxu1 %v5576_v38  ;;  %3639 = vmatprep.subr.bf16.mxu0 %v5548_v39 }
 0x24d   : > { %3680 = vmatprep.subr.bf16.mxu1 %v5584_v40 }
 0x24f   : > { %3640 = vmatpush1.bf16.msra.mxu0 %v5546_v41 }
 0x250   : > { %3681 = vmatpush1.bf16.msra.mxu1 %v5582_v42  ;;  %3641 = vmatprep.subr.bf16.mxu0 %v5551_v43 }
 0x251   : > { %3682 = vmatprep.subr.bf16.mxu1 %v5590_v44 }
 0x253   : > { %3642 = vmatpush1.bf16.msra.mxu0 %v5549_v45 }
 0x254   : > { %3683 = vmatpush1.bf16.msra.mxu1 %v5588_v46  ;;  %3643 = vmatprep.subr.bf16.mxu0 %v5554_v47 }
 0x255   : > { %3684 = vmatprep.subr.bf16.mxu1 %v5596_v49 }
 0x257   : > { %3644 = vmatpush1.bf16.msra.mxu0 %v5552_v50 }
 0x258   : > { %3685 = vmatpush1.bf16.msra.mxu1 %v5594_v51  ;;  %3645 = vmatprep.subr.bf16.mxu0 %v5557_v52 }
 0x259   : > { %3686 = vmatprep.subr.bf16.mxu1 %v5602_v54 }
 0x25b   : > { %3646 = vmatpush1.bf16.msra.mxu0 %v5555_v55  ;;  %v491_v55 = vld [vmem:[#allocation2] sm:$0xff] }
 0x25c   : > { %3687 = vmatpush1.bf16.msra.mxu1 %v5600_v56  ;;  %3647 = vmatprep.subr.bf16.mxu0 %v5563_v58 }
 0x25f   : > { %3705 = vmatmul.mubr.bf16.vlgmr.msra.gmra.mxu1 %v546_v59  ;;  %3648 = vmatpush2.bf16.msra.mxu0 %v5561_v60  ;;  %v492_v59 = vld [vmem:[#allocation2 + $0x8] sm:$0xff] }
 0x260   : > { %3649 = vmatprep.subr.bf16.mxu0 %v5569_v61 }
 0x263   : > { %3650 = vmatpush2.bf16.msra.mxu0 %v5567_v62 }
 0x264   : > { %3651 = vmatprep.subr.bf16.mxu0 %v5575_v63 }
 0x267   : > { %3652 = vmatpush2.bf16.msra.mxu0 %v5573_v0 }
 0x268   : > { %3653 = vmatprep.subr.bf16.mxu0 %v5581_v1 }
 0x26b   : > { %3654 = vmatpush2.bf16.msra.mxu0 %v5579_v2 }
 0x26c   : > { %3655 = vmatprep.subr.bf16.mxu0 %v5587_v3 }
 0x26f   : > { %3656 = vmatpush2.bf16.msra.mxu0 %v5585_v4 }
 0x270   : > { %3657 = vmatprep.subr.bf16.mxu0 %v5593_v5 }
 0x273   : > { %3658 = vmatpush2.bf16.msra.mxu0 %v5591_v6 }
 0x274   : > { %3659 = vmatprep.subr.bf16.mxu0 %v5599_v7 }
 0x277   : > { %3660 = vmatpush2.bf16.msra.mxu0 %v5597_v8 }
 0x278   : > { %3661 = vmatprep.subr.bf16.mxu0 %v5605_v9 }
 0x27b   : > { %3662 = vmatpush2.bf16.msra.mxu0 %v5603_v48 }
 0x27e   : > { %v3419_v14 = vpop.f32.mrf.mxu0  ;;  %3664 = vmatmul.mubr.bf16.vlgmr.msra.gmra.mxu0 %v544_v13 }
 0x27f   : > { %v3460_v15 = vpop.f32.mrf.mxu1  ;;  %v3420_v53 = vadd.f32 %v3419_v14, %v6658_v28 }
 0x280   : > { %v3421_v16 = vpop.f32.mrf.mxu0 }
 0x281   : > { %v3462_v17 = vpop.f32.mrf.mxu1  ;;  %v3422_v18 = vadd.f32 %v3421_v16, %v6660_v31  ;;  %v3461_v19 = vadd.f32 %v3460_v15, %v3420_v53 }
 0x282   : > { %v3423_v20 = vpop.f32.mrf.mxu0 }
 0x283   : > { %v3464_v21 = vpop.f32.mrf.mxu1  ;;  %v3463_v22 = vadd.f32 %v3462_v17, %v3422_v18 }
 0x284   : > { %v3424_v23 = vpop.f32.mrf.mxu0 }
 0x285   : > { %v3465_v24 = vpop.f32.mrf.mxu1 }
 0x2be   : > { %v3501_v25 = vpop.f32.mrf.mxu0 }
 0x2bf   : > { %v3542_v26 = vpop.f32.mrf.mxu1  ;;  %v3502_v27 = vadd.f32 %v3501_v25, %v3461_v19 }
 0x2c0   : > { %v3503_v29 = vpop.f32.mrf.mxu0 }
 0x2c1   : > { %v3544_v10 = vpop.f32.mrf.mxu1  ;;  %v3504_v30 = vadd.f32 %v3503_v29, %v3463_v22  ;;  %v3543_v32 = vadd.f32 %v3542_v26, %v3502_v27 }
 0x2c2   : > { %v3505_v33 = vpop.f32.mrf.mxu0 }
 0x2c3   : > { %v3546_v28 = vpop.f32.mrf.mxu1  ;;  %v3545_v12 = vadd.f32 %v3544_v10, %v3504_v30 }
 0x2c4   : > { %v3506_v34 = vpop.f32.mrf.mxu0 }
 0x2c5   : > { %v3547_v35 = vpop.f32.mrf.mxu1 }
 0x2fe   : > { %v3583_v31 = vpop.f32.mrf.mxu0 }
 0x2ff   : > { %v3624_v36 = vpop.f32.mrf.mxu1  ;;  %v3584_v47 = vadd.f32 %v3583_v31, %v3543_v32 }
 0x300   : > { %v3585_v37 = vpop.f32.mrf.mxu0 }
 0x301   : > { %v3626_v38 = vpop.f32.mrf.mxu1  ;;  %v3586_v49 = vadd.f32 %v3585_v37, %v3545_v12  ;;  %v3625_v50 = vadd.f32 %v3624_v36, %v3584_v47 }
 0x302   : > { %v3587_v39 = vpop.f32.mrf.mxu0 }
 0x303   : > { %v3628_v40 = vpop.f32.mrf.mxu1  ;;  %v3627_v52 = vadd.f32 %v3626_v38, %v3586_v49 }
 0x304   : > { %v3588_v41 = vpop.f32.mrf.mxu0 }
 0x305   : > { %v3629_v42 = vpop.f32.mrf.mxu1 }
 0x31f   : > { %v3706_v43 = vpop.f32.mrf.mxu1 }
 0x321   : > { %v3708_v44 = vpop.f32.mrf.mxu1 }
 0x323   : > { %v3710_v45 = vpop.f32.mrf.mxu1 }
 0x325   : > { %v3711_v46 = vpop.f32.mrf.mxu1 }
 0x33e   : > { %v3665_v51 = vpop.f32.mrf.mxu0 }
 0x33f   : > { %v3666_v54 = vadd.f32 %v3665_v51, %v3625_v50 }
 0x340   : > { %v3667_v56 = vpop.f32.mrf.mxu0 }
 0x341   : > { %v3707_v57 = vadd.f32 %v3706_v43, %v3666_v54  ;;  %v3668_v58 = vadd.f32 %v3667_v56, %v3627_v52 }
 0x342   : > { %v3669_v60 = vpop.f32.mrf.mxu0 }
 0x343   : > { %v3713_v61 = vadd.f32 %v3707_v57, %v491_v55  ;;  %v3709_v62 = vadd.f32 %v3708_v44, %v3668_v58  ;;  %3720 = sbr.rel (%p4738_p7) target bundleno = 1104 (0x450), region = 84 }
 0x344   : > { %v3670_v63 = vpop.f32.mrf.mxu0 }
 0x345   : > { %3715 = vst [vmem:[#allocation2] sm:$0xff] %v3713_v61  ;;  %v3714_v0 = vadd.f32 %v3709_v62, %v492_v59 }
 0x347   : > { %3716 = vst [vmem:[#allocation2 + $0x8] sm:$0xff] %v3714_v0 }
 0x348   : > { %v5606_v1 = vld [vmem:[%s6208_s14 + $0x74] ss:$8 sps:$4 sm:$0xff]   ;;  %v5608_v2 = vld [vmem:[%s6208_s14 + $0x70] ss:$8 sps:$4 sm:$0xff]   ;;  %v5609_v3 = vld [vmem:[%s6208_s14 + $0x64] ss:$8 sps:$4 sm:$0xff]   ;;  %v3725_v8 = vlaneseq }
 0x349   : > { %3935 = vmatprep.subr.bf16.mxu0 %v5606_v1  ;;  %v5611_v4 = vld [vmem:[%s6208_s14 + $0x60] ss:$8 sps:$4 sm:$0xff]   ;;  %v5612_v5 = vld [vmem:[%s6208_s14 + $0x54] ss:$8 sps:$4 sm:$0xff]   ;;  %v5614_v6 = vld [vmem:[%s6208_s14 + $0x50] ss:$8 sps:$4 sm:$0xff]  }
 0x34a   : > { %3936 = vmatpush1.bf16.msra.mxu0 %v5608_v2  ;;  %v5615_v7 = vld [vmem:[%s6208_s14 + $0x44] ss:$8 sps:$4 sm:$0xff]   ;;  %v5617_v9 = vld [vmem:[%s6208_s14 + $0x40] ss:$8 sps:$4 sm:$0xff]   ;;  %v5618_v48 = vld [vmem:[%s6208_s14 + $0x34] ss:$8 sps:$4 sm:$0xff]  }
 0x34b   : > { %3937 = vmatprep.subr.bf16.mxu0 %v5609_v3  ;;  %v3726_v11 = vshrl.u32 %v3725_v8, 7  ;;  %v5620_v13 = vld [vmem:[%s6208_s14 + $0x30] ss:$8 sps:$4 sm:$0xff]   ;;  %v5621_v14 = vld [vmem:[%s6208_s14 + $0x24] ss:$8 sps:$4 sm:$0xff]  }
 0x34c   : > { %v5623_v53 = vld [vmem:[%s6208_s14 + $0x20] ss:$8 sps:$4 sm:$0xff]   ;;  %v5624_v16 = vld [vmem:[%s6208_s14 + $0x14] ss:$8 sps:$4 sm:$0xff]   ;;  %v5626_v20 = vld [vmem:[%s6208_s14 + $0x10] ss:$8 sps:$4 sm:$0xff]  }
 0x34d   : > { %v3731_v15 = vsub.s32 1, %v3726_v11  ;;  %v3723_v18 = vld [vmem:[%s389_s30] sm:$0x3]  ;;  %v5627_v21 = vld [vmem:[%s6208_s14 + $0x4] ss:$8 sps:$4 sm:$0xff]   ;;  %v3727_v34 = vsub.s32 0, %v3726_v11 }
 0x34e   : > { %3938 = vmatpush1.bf16.msra.mxu0 %v5611_v4  ;;  %v3722_v17 = vld [vmem:[#allocation2 + $0x8] sm:$0xff]  ;;  %v5630_v25 = vld [vmem:[%s6208_s14 + $0xf4] ss:$8 sps:$4 sm:$0xff]   ;;  %v5632_v27 = vld [vmem:[%s6208_s14 + $0xf0] ss:$8 sps:$4 sm:$0xff]  }
 0x34f   : > { %3939 = vmatprep.subr.bf16.mxu0 %v5612_v5  ;;  %v3732_v19 = vrot.slane %v3723_v18, %v3731_v15  ;;  %v5629_v24 = vld [vmem:[%s6208_s14] ss:$8 sps:$4 sm:$0xff]   ;;  %v5633_v29 = vld [vmem:[%s6208_s14 + $0xe4] ss:$8 sps:$4 sm:$0xff]   ;;  %v5636_v30 = vld [vmem:[%s6208_s14 + $0xd4] ss:$8 sps:$4 sm:$0xff]   ;;  %v3728_v36 = vrot.slane %v3723_v18, %v3727_v34 }
 0x350   : > { %v5635_v10 = vld [vmem:[%s6208_s14 + $0xe0] ss:$8 sps:$4 sm:$0xff]   ;;  %v5638_v32 = vld [vmem:[%s6208_s14 + $0xd0] ss:$8 sps:$4 sm:$0xff]   ;;  %v5639_v33 = vld [vmem:[%s6208_s14 + $0xc4] ss:$8 sps:$4 sm:$0xff]  }
 0x351   : > { %v3736_v22 = vadd.f32 %v3732_v19, %v3722_v17  ;;  %v5641_v28 = vld [vmem:[%s6208_s14 + $0xc0] ss:$8 sps:$4 sm:$0xff]   ;;  %v5642_v12 = vld [vmem:[%s6208_s14 + $0xb4] ss:$8 sps:$4 sm:$0xff]   ;;  %v5644_v35 = vld [vmem:[%s6208_s14 + $0xb0] ss:$8 sps:$4 sm:$0xff]  }
 0x352   : > { %3940 = vmatpush1.bf16.msra.mxu0 %v5614_v6  ;;  %v5645_v31 = vld [vmem:[%s6208_s14 + $0xa4] ss:$8 sps:$4 sm:$0xff]   ;;  %v5647_v37 = vld [vmem:[%s6208_s14 + $0xa0] ss:$8 sps:$4 sm:$0xff]   ;;  %v5648_v39 = vld [vmem:[%s6208_s14 + $0x94] ss:$8 sps:$4 sm:$0xff]  }
 0x353   : > { %3941 = vmatprep.subr.bf16.mxu0 %v5615_v7  ;;  %v3738_v23 = vmax.f32 %v3736_v22, 0.0  ;;  %v3721_v38 = vld [vmem:[#allocation2] sm:$0xff]  ;;  %v5650_v41 = vld [vmem:[%s6208_s14 + $0x90] ss:$8 sps:$4 sm:$0xff]   ;;  %v5651_v42 = vld [vmem:[%s6208_s14 + $0x84] ss:$8 sps:$4 sm:$0xff]  }
 0x354   : > { %v3735_v40 = vadd.f32 %v3728_v36, %v3721_v38  ;;  %v5653_v44 = vld [vmem:[%s6208_s14 + $0x80] ss:$8 sps:$4 sm:$0xff]   ;;  %v3739_v46 = vld [vmem:[#allocation3 + $0x8] sm:$0xff]  ;;  %v3740_v49 = vld [vmem:[#allocation3] sm:$0xff] }
 0x355   : > { %v3742_v26 = vpack.c.bf16 %v3738_v23, %v3738_v23 }
 0x356   : > { %3942 = vmatpush1.bf16.msra.mxu0 %v5617_v9  ;;  %v3737_v43 = vmax.f32 %v3735_v40, 0.0 }
 0x357   : > { %3943 = vmatprep.subr.bf16.mxu0 %v5618_v48  ;;  %3967 = vmatprep.mubr.bf16.mxu0 %v3742_v26 }
 0x358   : > { %v3741_v45 = vpack.c.bf16 %v3737_v43, %v3737_v43 }
 0x35a   : > { %3944 = vmatpush1.bf16.msra.mxu0 %v5620_v13 }
 0x35b   : > { %3945 = vmatprep.subr.bf16.mxu0 %v5621_v14 }
 0x35e   : > { %3946 = vmatpush1.bf16.msra.mxu0 %v5623_v53 }
 0x35f   : > { %3947 = vmatprep.subr.bf16.mxu0 %v5624_v16 }
 0x362   : > { %3948 = vmatpush1.bf16.msra.mxu0 %v5626_v20 }
 0x363   : > { %3949 = vmatprep.subr.bf16.mxu0 %v5627_v21 }
 0x366   : > { %3950 = vmatpush1.bf16.msra.mxu0 %v5629_v24 }
 0x367   : > { %3951 = vmatprep.subr.bf16.mxu0 %v5630_v25 }
 0x36a   : > { %3952 = vmatpush2.bf16.msra.mxu0 %v5632_v27 }
 0x36b   : > { %3953 = vmatprep.subr.bf16.mxu0 %v5633_v29 }
 0x36e   : > { %3954 = vmatpush2.bf16.msra.mxu0 %v5635_v10 }
 0x36f   : > { %3955 = vmatprep.subr.bf16.mxu0 %v5636_v30 }
 0x372   : > { %3956 = vmatpush2.bf16.msra.mxu0 %v5638_v32 }
 0x373   : > { %3957 = vmatprep.subr.bf16.mxu0 %v5639_v33 }
 0x376   : > { %3958 = vmatpush2.bf16.msra.mxu0 %v5641_v28 }
 0x377   : > { %3959 = vmatprep.subr.bf16.mxu0 %v5642_v12 }
 0x37a   : > { %3960 = vmatpush2.bf16.msra.mxu0 %v5644_v35 }
 0x37b   : > { %3961 = vmatprep.subr.bf16.mxu0 %v5645_v31 }
 0x37e   : > { %3962 = vmatpush2.bf16.msra.mxu0 %v5647_v37 }
 0x37f   : > { %3963 = vmatprep.subr.bf16.mxu0 %v5648_v39 }
 0x382   : > { %3964 = vmatpush2.bf16.msra.mxu0 %v5650_v41 }
 0x383   : > { %3965 = vmatprep.subr.bf16.mxu0 %v5651_v42 }
 0x386   : > { %3966 = vmatpush2.bf16.msra.mxu0 %v5653_v44 }
 0x389   : > { %3968 = vmatmul.mubr.bf16.vlgmr.msra.gmra.mxu0 %v3741_v45 }
 0x449   : > { %v3969_v47 = vpop.f32.mrf.mxu0 }
 0x44a   : > { %v3976_v50 = vadd.f32 %v3969_v47, %v3739_v46 }
 0x44b   : > { %v3971_v51 = vpop.f32.mrf.mxu0 }
 0x44c   : > { %3978 = vst [vmem:[#allocation3 + $0x8] sm:$0xff] %v3976_v50  ;;  %v3977_v52 = vadd.f32 %v3971_v51, %v3740_v49 }
 0x44d   : > { %v3973_v54 = vpop.f32.mrf.mxu0 }
 0x44e   : > { %3979 = vst [vmem:[#allocation3] sm:$0xff] %v3977_v52 }
 0x44f   : > { %v3974_v55 = vpop.f32.mrf.mxu0 }
 0x450 PF: > { %s6846_s26 = sld [smem:[#allocation21_spill]] }
 0x456   : > { %p3980_p11 = scmp.eq.s32.totalorder %s6846_s26, 1 }
 0x458   : > { %p3981_p12 = pnand %p3980_p11, %p3717_p6 }
 0x459   : > { %s6848_s27 = sld [smem:[#allocation32_spill]] (!%p3981_p12) }
 0x45a   : > { %3984 = sbr.rel (%p3981_p12) target bundleno = 1352 (0x548), region = 88 }
 0x45f   : > { %v4034_v56 = vld [vmem:[#allocation11 + $0xf8] sm:$0xff]  ;;  %v4033_v58 = vld [vmem:[#allocation11 + $0xf0] sm:$0xff]  ;;  %v3989_v59 = vlaneseq  ;;  %v4032_v61 = vld [vmem:[#allocation11 + $0xe8] sm:$0xff] }
 0x460   : > { %v4018_v57 = vld [vmem:[#allocation11 + $0x78] sm:$0xff]  ;;  %4779 = vmatprep.subr.mxu0 %v4034_v56  ;;  %v4017_v60 = vld [vmem:[#allocation11 + $0x70] sm:$0xff]  ;;  %v4016_v62 = vld [vmem:[#allocation11 + $0x68] sm:$0xff] }
 0x461   : > { %4780 = vmatpush3.msra.mxu0 %v4018_v57  ;;  %v4031_v63 = vld [vmem:[#allocation11 + $0xe0] sm:$0xff]  ;;  %v3990_v0 = vshrl.u32 %v3989_v59, 7  ;;  %v4030_v2 = vld [vmem:[#allocation11 + $0xd8] sm:$0xff]  ;;  %v4029_v4 = vld [vmem:[#allocation11 + $0xd0] sm:$0xff] }
 0x462   : > { %4781 = vmatprep.subr.mxu0 %v4033_v58  ;;  %v4015_v1 = vld [vmem:[#allocation11 + $0x60] sm:$0xff]  ;;  %v4014_v3 = vld [vmem:[#allocation11 + $0x58] sm:$0xff]  ;;  %v4013_v6 = vld [vmem:[#allocation11 + $0x50] sm:$0xff] }
 0x463   : > { %4782 = vmatpush3.msra.mxu0 %v4017_v60  ;;  %v3995_v5 = vsub.s32 1, %v3990_v0  ;;  %v4028_v7 = vld [vmem:[#allocation11 + $0xc8] sm:$0xff]  ;;  %v3987_v48 = vld [vmem:[#allocation9] sm:$0x3]  ;;  %v4027_v11 = vld [vmem:[#allocation11 + $0xc0] sm:$0xff]  ;;  %v3991_v20 = vsub.s32 0, %v3990_v0 }
 0x464   : > { %4783 = vmatprep.subr.mxu0 %v4032_v61  ;;  %v4012_v8 = vld [vmem:[#allocation11 + $0x48] sm:$0xff]  ;;  %v4011_v14 = vld [vmem:[#allocation11 + $0x40] sm:$0xff]  ;;  %v4026_v15 = vld [vmem:[#allocation11 + $0xb8] sm:$0xff] }
 0x465   : > { %4784 = vmatpush3.msra.mxu0 %v4016_v62  ;;  %v3986_v9 = vld [vmem:[#allocation3] sm:$0xff]  ;;  %v3996_v13 = vrot.slane %v3987_v48, %v3995_v5  ;;  %v4010_v16 = vld [vmem:[#allocation11 + $0x38] sm:$0xff]  ;;  %v4023_v23 = vld [vmem:[#allocation11 + $0xa0] sm:$0xff]  ;;  %v3992_v25 = vrot.slane %v3987_v48, %v3991_v20 }
 0x466   : > { %4785 = vmatprep.subr.mxu0 %v4031_v63  ;;  %v4025_v17 = vld [vmem:[#allocation11 + $0xb0] sm:$0xff]  ;;  %v4024_v21 = vld [vmem:[#allocation11 + $0xa8] sm:$0xff]  ;;  %v4007_v24 = vld [vmem:[#allocation11 + $0x20] sm:$0xff] }
 0x467   : > { %4786 = vmatpush3.msra.mxu0 %v4015_v1  ;;  %v4000_v53 = vadd.f32 %v3996_v13, %v3986_v9  ;;  %v4009_v19 = vld [vmem:[#allocation11 + $0x30] sm:$0xff]  ;;  %v4008_v22 = vld [vmem:[#allocation11 + $0x28] sm:$0xff]  ;;  %v4022_v26 = vld [vmem:[#allocation11 + $0x98] sm:$0xff] }
 0x468   : > { %4787 = vmatprep.subr.mxu0 %v4030_v2  ;;  %v3985_v27 = vld [vmem:[#allocation3 + $0x8] sm:$0xff]  ;;  %v4020_v33 = vld [vmem:[#allocation11 + $0x88] sm:$0xff]  ;;  %v4019_v12 = vld [vmem:[#allocation11 + $0x80] sm:$0xff] }
 0x469   : > { %4788 = vmatpush3.msra.mxu0 %v4014_v3  ;;  %v4002_v18 = vmax.f32 %v4000_v53, 0.0  ;;  %v4006_v29 = vld [vmem:[#allocation11 + $0x18] sm:$0xff]  ;;  %v4021_v10 = vld [vmem:[#allocation11 + $0x90] sm:$0xff]  ;;  %v3999_v32 = vadd.f32 %v3992_v25, %v3985_v27  ;;  %v4004_v28 = vld [vmem:[#allocation11 + $0x8] sm:$0xff] }
 0x46a   : > { %4789 = vmatprep.subr.mxu0 %v4029_v4  ;;  %v4005_v30 = vld [vmem:[#allocation11 + $0x10] sm:$0xff]  ;;  %v4003_v34 = vld [vmem:[#allocation11] sm:$0xff] }
 0x46b   : > { %4790 = vmatpush3.msra.mxu0 %v4013_v6  ;;  %4106 = vmatprep.mubr.f32.mxu0 %v4002_v18  ;;  %v4001_v35 = vmax.f32 %v3999_v32, 0.0  ;;  %v4771_v36 = vld [vmem:[#allocation12] ss:$0 sm:$0xff] }
 0x46c   : > { %4791 = vmatprep.subr.mxu0 %v4028_v7 }
 0x46d   : > { %4792 = vmatpush3.msra.mxu0 %v4012_v8 }
 0x46e   : > { %4793 = vmatprep.subr.mxu0 %v4027_v11 }
 0x46f   : > { %4794 = vmatpush3.msra.mxu0 %v4011_v14 }
 0x470   : > { %4795 = vmatprep.subr.mxu0 %v4026_v15 }
 0x471   : > { %4796 = vmatpush3.msra.mxu0 %v4010_v16 }
 0x472   : > { %4797 = vmatprep.subr.mxu0 %v4025_v17 }
 0x473   : > { %4798 = vmatpush3.msra.mxu0 %v4009_v19 }
 0x474   : > { %4799 = vmatprep.subr.mxu0 %v4024_v21 }
 0x475   : > { %4800 = vmatpush3.msra.mxu0 %v4008_v22 }
 0x476   : > { %4801 = vmatprep.subr.mxu0 %v4023_v23 }
 0x477   : > { %4802 = vmatpush3.msra.mxu0 %v4007_v24 }
 0x478   : > { %4803 = vmatprep.subr.mxu0 %v4022_v26 }
 0x479   : > { %4804 = vmatpush3.msra.mxu0 %v4006_v29 }
 0x47a   : > { %4805 = vmatprep.subr.mxu0 %v4021_v10 }
 0x47b   : > { %4806 = vmatpush3.msra.mxu0 %v4005_v30 }
 0x47c   : > { %4807 = vmatprep.subr.mxu0 %v4020_v33 }
 0x47d   : > { %4808 = vmatpush3.msra.mxu0 %v4004_v28 }
 0x47e   : > { %4809 = vmatprep.subr.mxu0 %v4019_v12 }
 0x47f   : > { %4810 = vmatpush3.msra.mxu0 %v4003_v34 }
 0x480   : > { %4107 = vmatmul.mubr.f32.vlgmr.msra.gmra.mxu0 %v4001_v35 }
 0x540   : > { %v4811_v31 = vpop.f32.mrf.mxu0 }
 0x542   : > { %v4812_v37 = vpop.f32.mrf.mxu0 }
 0x543   : > { %v4813_v38 = vadd.f32 %v4812_v37, %v4811_v31 }
 0x545   : > { %v4109_v39 = vadd.f32 %v4813_v38, %v4771_v36 }
 0x547   : > { %4112 = vst [vmem:[%s6848_s27] sm:$0xff] %v4109_v39 }
 0x548 PF: > { %s25_s11 = sadd.s32 1, %s5918_s11   ;;  %s6849_s21 = sld [smem:[#allocation18_spill]] }
 0x549   : > { %p22_p0 = scmp.ge.s32.totalorder %s25_s11, 10   ;;  %s6850_s26 = sld [smem:[#allocation26_spill]] }
 0x54a   : > { %s6851_s19 = sld [smem:[#allocation19_spill]]  ;;  %s6855_s24 = smov %s5882_s25 }
 0x54b   : > { %s6852_s29 = sld [smem:[#allocation27_spill]]  ;;  %s6857_s27 = smov %s5894_s28 }
 0x54c   : > { %s6853_s23 = sld [smem:[#allocation23_spill]]  ;;  %s6859_s30 = smov %s5910_s9 }
 0x54d   : > { %s6854_s15 = sld [smem:[#allocation24_spill]]  ;;  %s6860_s8 = smov %s5914_s10 }
 0x54e   : > { %s6856_s25 = smov %s6849_s21 }
 0x54f   :  { %24 = sbr.rel (!%p22_p0) target bundleno = 17 (0x11), region = 143 }
 0x550   : > { %s6858_s28 = smov %s6851_s19 }
 0x552   : > { %s6861_s9 = smov %s6853_s23 }
 0x553   : > { %s6862_s10 = smov %s6854_s15 }
 0x554   :  { %4132 = vsyncpa [#allocation5], 1 }
 0x555   :  { %4134 = vsyncpa [#allocation5 + $0x1], 1 }
 0x556   :  { %4135 = vsyncpa [#allocation7], 1 }
 0x557   :  { %4137 = vsyncpa [#allocation7 + $0x1], 1 }
 0x558   :  { %4138 = vsyncpa [#allocation10], 1 }
 0x559   :  { %4139 = vsyncpa [#allocation13], 1 }

</bundles_post_ra>
